<compile_context>
chip_gen: v7x
topology: tpu7x:2x2x1
jax: 0.10.0
libtpu: 0.0.40
codegen_flags: <defaults>
</compile_context>

<pallas_src>
import functools

import jax
import jax.numpy as jnp
from jax.experimental import pallas as pl
from jax.experimental.pallas import tpu as pltpu


def _round_up(x, m):
    return ((x + m - 1) // m) * m


def _vmem_tile_bytes(rows, cols):
    """f32 VMEM footprint of a (rows, cols) buffer after (8, 128) tiling."""
    return _round_up(max(rows, 1), 8) * _round_up(max(cols, 1), 128) * 4


def _vmem_capacity_bytes():
    try:
        return int(pltpu.get_tpu_info().vmem_capacity_bytes)
    except Exception:
        return 64 * 1024 * 1024          # conservative fallback = v7x per-core VMEM


# --------------------- kernel 1: conv (im2col matmul) + per-tile batch stats ------------------

def conv_stats_kernel(p_ref, w_ref, y_ref, psum_ref, pssq_ref, *, m_valid):
    """grid = (nM, nK): M tiles parallel, K (im2col) reduction innermost / arbitrary.

    The f32 conv result accumulates directly in the resident output block; at the last K step
    per-tile partial channel sums / sums-of-squares are emitted, so no shared scratch is needed
    and the M axis stays megacore-parallel.
    """
    i = pl.program_id(0)
    k = pl.program_id(1)
    nk = pl.num_programs(1)

    @pl.when(k == 0)
    def _init():
        y_ref[...] = jnp.zeros_like(y_ref)

    y_ref[...] += jnp.dot(p_ref[...], w_ref[...], preferred_element_type=jnp.float32)

    @pl.when(k == nk - 1)
    def _stats():
        tm, cp = y_ref.shape
        y = y_ref[...]
        if m_valid % tm != 0:
            # Ragged last M tile handled in-kernel (no HBM padding of M): drop garbage rows from
            # the statistics; their y/out rows never reach HBM (partial-block writeback).
            row = jax.lax.broadcasted_iota(jnp.int32, (tm, cp), 0) + i * tm
            y = jnp.where(row < m_valid, y, 0.0)
        ps = jnp.sum(y, axis=0, keepdims=True)               # (1, cp)
        pq = jnp.sum(y * y, axis=0, keepdims=True)
        # Store a sublane-broadcast copy (dense (8, cp) block); the wrapper reads row 0 per tile.
        psum_ref[...] = jnp.broadcast_to(ps, (8, cp))
        pssq_ref[...] = jnp.broadcast_to(pq, (8, cp))


# --------------------------- kernel 2: folded BN affine + ReLU --------------------------------

def bn_relu_kernel(y_ref, scale_ref, shift_ref, o_ref):
    o_ref[...] = jnp.maximum(y_ref[...] * scale_ref[...] + shift_ref[...], 0.0)


# ------------------------------------------ wrapper -------------------------------------------

def _pick_tm(M, tk, CP, w_bufs, budget_bytes):
    """Largest M tile whose per-step VMEM footprint (incl. compiler temporaries) fits budget."""
    def footprint(tm):
        return (2 * _vmem_tile_bytes(tm, tk)          # patches tile (double-buffered)
                + w_bufs * _vmem_tile_bytes(tk, CP)   # weight tile (single-buffered if resident)
                + 2 * _vmem_tile_bytes(tm, CP)        # resident y output block (2 buffers)
                + 4 * _vmem_tile_bytes(8, CP)         # partial-sum output blocks
                + 3 * _vmem_tile_bytes(tm, CP))       # compiler-managed temporaries (y*y, mask)
    cap = max(8, _round_up(M, 8))
    cands = sorted({c for c in (8, 16, 32, 64, 128, 256, 512, 1024, 2048, cap) if c <= cap})
    tm = cands[0]
    for cand in cands:
        if footprint(cand) <= budget_bytes:
            tm = cand
    return tm, footprint(tm)


def conv_block_forward(x_nchw, weight, bias, gamma, beta, *, stride, padding, eps=1e-5):
    del bias  # exactly cancelled by train-mode BatchNorm mean subtraction (see header comment)

    N, Cin, H, W = x_nchw.shape
    Cout, _, KH, KW = weight.shape

    # ---- wrapper glue: NCHW -> NHWC, zero-pad, im2col (TODO(synk): move kh/kw into kernel) ----
    x = jnp.transpose(x_nchw, (0, 2, 3, 1)).astype(jnp.float32)          # (N, H, W, Cin)
    xp = jnp.pad(x, ((0, 0), (padding, padding), (padding, padding), (0, 0)))
    Hp, Wp = H + 2 * padding, W + 2 * padding
    Ho = (Hp - KH) // stride + 1
    Wo = (Wp - KW) // stride + 1

    cols = []
    for kh in range(KH):
        for kw in range(KW):
            cols.append(xp[:, kh:kh + (Ho - 1) * stride + 1:stride,
                              kw:kw + (Wo - 1) * stride + 1:stride, :])
    patches = jnp.concatenate(cols, axis=-1)                              # (N, Ho, Wo, KH*KW*Cin)

    M = N * Ho * Wo
    Kdim = KH * KW * Cin

    # ---- channel / K layout (trade lane-density against HBM bytes, per review) ---------------
    # Cout <= 128: keep the true Cout as the (full-dim) last block dim -> masked stores but up
    # to 16x less y / out HBM traffic.  Cout > 128: round up to a lane-dense 128 multiple.
    CP = Cout if Cout <= 128 else _round_up(Cout, 128)
    # Small Kdim: one full-dim K block, no padding at all.  Large Kdim: tile K by tk=512.
    if Kdim <= 1024:
        tk, KP = Kdim, Kdim
    else:
        tk = 512
        KP = _round_up(Kdim, tk)
    nK = KP // tk

    patches_mat = patches.reshape(M, Kdim)
    w_mat = jnp.transpose(weight, (2, 3, 1, 0)).reshape(Kdim, Cout).astype(jnp.float32)
    if KP != Kdim:                       # only when K is actually tiled; otherwise no pad copy
        patches_mat = jnp.pad(patches_mat, ((0, 0), (0, KP - Kdim)))
        w_mat = jnp.pad(w_mat, ((0, KP - Kdim), (0, 0)))
    gamma_p = gamma.astype(jnp.float32)
    beta_p = beta.astype(jnp.float32)
    if CP != Cout:
        w_mat = jnp.pad(w_mat, ((0, 0), (0, CP - Cout)))
        gamma_p = jnp.pad(gamma_p, (0, CP - Cout))
        beta_p = jnp.pad(beta_p, (0, CP - Cout))

    # ---- per-generation VMEM budget (64 MiB v7x vs 128 MiB v5e/v6e) ---------------------------
    vmem_cap = _vmem_capacity_bytes()
    budget = int(vmem_cap * 0.6)
    w_bufs = 1 if nK == 1 else 2
    tm, per_step = _pick_tm(M, tk, CP, w_bufs, budget)
    nM = pl.cdiv(M, tm)
    vmem_limit = int(min(vmem_cap * 0.9, max(2 * per_step, 32 * 1024 * 1024)))

    # ---- pass 1: conv + per-tile batch statistics (M parallel, K arbitrary) -------------------
    if nK == 1:   # weight is resident: single-buffer it (halves its VMEM footprint)
        w_spec = pl.BlockSpec((tk, CP), lambda i, k: (0, 0), pipeline_mode=pl.Buffered(1))
    else:
        w_spec = pl.BlockSpec((tk, CP), lambda i, k: (k, 0))

    y_flat, psum, pssq = pl.pallas_call(
        functools.partial(conv_stats_kernel, m_valid=M),
        out_shape=(jax.ShapeDtypeStruct((M, CP), jnp.float32),
                   jax.ShapeDtypeStruct((nM * 8, CP), jnp.float32),
                   jax.ShapeDtypeStruct((nM * 8, CP), jnp.float32)),
        grid_spec=pltpu.PrefetchScalarGridSpec(
            num_scalar_prefetch=0,
            grid=(nM, nK),
            in_specs=[pl.BlockSpec((tm, tk), lambda i, k: (i, k)),
                      w_spec],
            out_specs=[pl.BlockSpec((tm, CP), lambda i, k: (i, 0)),
                       pl.BlockSpec((8, CP), lambda i, k: (i, 0)),
                       pl.BlockSpec((8, CP), lambda i, k: (i, 0))]),
        compiler_params=pltpu.CompilerParams(
            dimension_semantics=("parallel", "arbitrary"),
            vmem_limit_bytes=vmem_limit),
    )(patches_mat, w_mat)

    # ---- fold BN into a per-channel affine (tiny (CP,) math, plain XLA) -----------------------
    tot = psum.reshape(nM, 8, CP)[:, 0, :].sum(axis=0)
    tot2 = pssq.reshape(nM, 8, CP)[:, 0, :].sum(axis=0)
    mean = tot / M
    var = jnp.maximum(tot2 / M - mean * mean, 0.0)       # biased var (PyTorch BN train mode)
    inv_std = jax.lax.rsqrt(var + eps)
    scale = (gamma_p * inv_std).reshape(1, CP)
    shift = (beta_p - mean * gamma_p * inv_std).reshape(1, CP)
    # Padded channels (only when Cout > 128): sums are 0 -> scale 0, shift 0 -> output 0, sliced.

    # ---- pass 2: affine + ReLU; re-reads only y (M*CP), never the K-wide patches --------------
    out_flat = pl.pallas_call(
        bn_relu_kernel,
        out_shape=jax.ShapeDtypeStruct((M, CP), jnp.float32),
        grid_spec=pltpu.PrefetchScalarGridSpec(
            num_scalar_prefetch=0,
            grid=(nM,),
            in_specs=[pl.BlockSpec((tm, CP), lambda i: (i, 0)),
                      pl.BlockSpec((1, CP), lambda i: (0, 0), pipeline_mode=pl.Buffered(1)),
                      pl.BlockSpec((1, CP), lambda i: (0, 0), pipeline_mode=pl.Buffered(1))],
            out_specs=pl.BlockSpec((tm, CP), lambda i: (i, 0))),
        compiler_params=pltpu.CompilerParams(
            dimension_semantics=("parallel",),
            vmem_limit_bytes=vmem_limit),
    )(y_flat, scale, shift)

    if CP != Cout:
        out_flat = out_flat[:, :Cout]
    # NHWC -> NCHW only because the module contract is NCHW; skip if the consumer takes NHWC.
    return out_flat.reshape(N, Ho, Wo, Cout).transpose(0, 3, 1, 2)


# ------------------------------------------ reference -----------------------------------------

def _reference(x, weight, bias, gamma, beta, *, stride, padding, eps=1e-5):
    Cout = weight.shape[0]
    conv = jax.lax.conv_general_dilated(
        x, weight, window_strides=(stride, stride),
        padding=[(padding, padding), (padding, padding)],
        dimension_numbers=('NCHW', 'OIHW', 'NCHW')) + bias.reshape(1, Cout, 1, 1)
    m = conv.mean(axis=(0, 2, 3), keepdims=True)
    v = ((conv - m) ** 2).mean(axis=(0, 2, 3), keepdims=True)   # biased, as PyTorch BN uses
    y = (conv - m) / jnp.sqrt(v + eps) * gamma.reshape(1, Cout, 1, 1) + beta.reshape(1, Cout, 1, 1)
    return jnp.maximum(y, 0.0)


if __name__ == "__main__":
    # ConvBlock(in_channels=4, out_channels=8, kernel_size=3, stride=1, padding=1)
    N, Cin, H, W = 2, 4, 16, 16
    Cout, K, stride, padding = 8, 3, 1, 1

    key = jax.random.PRNGKey(0)
    kx, kw, kb, kg, kbe = jax.random.split(key, 5)
    x = jax.random.normal(kx, (N, Cin, H, W), dtype=jnp.float32)
    weight = 0.1 * jax.random.normal(kw, (Cout, Cin, K, K), dtype=jnp.float32)
    bias = 0.1 * jax.random.normal(kb, (Cout,), dtype=jnp.float32)
    gamma = 1.0 + 0.1 * jax.random.normal(kg, (Cout,), dtype=jnp.float32)
    beta = 0.1 * jax.random.normal(kbe, (Cout,), dtype=jnp.float32)

    out = conv_block_forward(x, weight, bias, gamma, beta, stride=stride, padding=padding)
    out = jax.block_until_ready(out)

    ref = _reference(x, weight, bias, gamma, beta, stride=stride, padding=padding)
    assert out.shape == (N, Cout, H, W), out.shape
    err = float(jnp.max(jnp.abs(out - ref)))
    assert jnp.allclose(out, ref, atol=1e-4, rtol=1e-4), err

    print("KERNEL_OK")
</pallas_src>

<mosaic_0001>
module attributes {stable_mosaic.version = 11 : i64} {
  func.func @conv_stats_kernel(%arg0: i32, %arg1: i32, %arg2: memref<512x36xf32, #tpu.memory_space<vmem>>, %arg3: memref<36x8xf32, #tpu.memory_space<vmem>>, %arg4: memref<512x8xf32, #tpu.memory_space<vmem>>, %arg5: memref<8x8xf32, #tpu.memory_space<vmem>>, %arg6: memref<8x8xf32, #tpu.memory_space<vmem>>) attributes {dimension_semantics = [#tpu.dimension_semantics<parallel>, #tpu.dimension_semantics<arbitrary>], iteration_bounds = array<i64: 1, 1>, scalar_prefetch = 0 : i64, scratch_operands = 0 : i64, tpu.core_type = #tpu.core_type<tc>, window_params = [{transform_indices = @transform_0, window_bounds = array<i64: 512, 36>}, {pipeline_mode = #tpu.pipeline_mode<synchronous>, transform_indices = @transform_1, window_bounds = array<i64: 36, 8>}, {transform_indices = @transform_2, window_bounds = array<i64: 512, 8>}, {transform_indices = @transform_3, window_bounds = array<i64: 8, 8>}, {transform_indices = @transform_4, window_bounds = array<i64: 8, 8>}]} {
    %c0_i32 = arith.constant 0 : i32
    %0 = arith.cmpi eq, %arg1, %c0_i32 : i32
    %1 = arith.extui %0 : i1 to i32
    %c0_i32_0 = arith.constant 0 : i32
    %2 = arith.cmpi ne, %1, %c0_i32_0 : i32
    scf.if %2 {
      %cst_10 = arith.constant 0.000000e+00 : f32
      %12 = vector.broadcast %cst_10 : f32 to vector<512x8xf32>
      %c0_11 = arith.constant 0 : index
      %c0_12 = arith.constant 0 : index
      %13 = vector.load %arg4[%c0_11, %c0_12] : memref<512x8xf32, #tpu.memory_space<vmem>>, vector<512x8xf32>
      tpu.vector_store %arg4[%c0_11, %c0_12], %12 {strides = array<i32>} : memref<512x8xf32, #tpu.memory_space<vmem>>, vector<512x8xf32>,
    } else {
    }
    %c0 = arith.constant 0 : index
    %c0_1 = arith.constant 0 : index
    %3 = vector.load %arg4[%c0, %c0_1] : memref<512x8xf32, #tpu.memory_space<vmem>>, vector<512x8xf32>
    %c0_2 = arith.constant 0 : index
    %c0_3 = arith.constant 0 : index
    %4 = vector.load %arg2[%c0_2, %c0_3] : memref<512x36xf32, #tpu.memory_space<vmem>>, vector<512x36xf32>
    %c0_4 = arith.constant 0 : index
    %c0_5 = arith.constant 0 : index
    %5 = vector.load %arg3[%c0_4, %c0_5] : memref<36x8xf32, #tpu.memory_space<vmem>>, vector<36x8xf32>
    %cst = arith.constant dense<0.000000e+00> : vector<512x8xf32>
    %6 = tpu.matmul %4, %5, %cst {dimension_numbers = #tpu.dot_dimension_numbers<[1], [0], [0], [1], [0, 0, 1, 1], [], []>} : vector<512x36xf32>, vector<36x8xf32>, vector<512x8xf32> -> vector<512x8xf32>
    %7 = arith.addf %3, %6 : vector<512x8xf32>
    %c0_6 = arith.constant 0 : index
    %c0_7 = arith.constant 0 : index
    %8 = vector.load %arg4[%c0_6, %c0_7] : memref<512x8xf32, #tpu.memory_space<vmem>>, vector<512x8xf32>
    tpu.vector_store %arg4[%c0_6, %c0_7], %7 {strides = array<i32>} : memref<512x8xf32, #tpu.memory_space<vmem>>, vector<512x8xf32>,
    %c0_i32_8 = arith.constant 0 : i32
    %9 = arith.cmpi eq, %arg1, %c0_i32_8 : i32
    %10 = arith.extui %9 : i1 to i32
    %c0_i32_9 = arith.constant 0 : i32
    %11 = arith.cmpi ne, %10, %c0_i32_9 : i32
    scf.if %11 {
      %c0_10 = arith.constant 0 : index
      %c0_11 = arith.constant 0 : index
      %12 = vector.load %arg4[%c0_10, %c0_11] : memref<512x8xf32, #tpu.memory_space<vmem>>, vector<512x8xf32>
      %cst_12 = arith.constant dense<0.000000e+00> : vector<8xf32>
      %13 = vector.multi_reduction <add>, %12, %cst_12 [0] : vector<512x8xf32> to vector<8xf32>
      %14 = vector.shape_cast %13 : vector<8xf32> to vector<1x8xf32>
      %15 = arith.mulf %12, %12 : vector<512x8xf32>
      %cst_13 = arith.constant dense<0.000000e+00> : vector<8xf32>
      %16 = vector.multi_reduction <add>, %15, %cst_13 [0] : vector<512x8xf32> to vector<8xf32>
      %17 = vector.shape_cast %16 : vector<8xf32> to vector<1x8xf32>
      %18 = vector.shape_cast %14 : vector<1x8xf32> to vector<1x8xf32>
      %19 = vector.broadcast %18 : vector<1x8xf32> to vector<8x8xf32>
      %c0_14 = arith.constant 0 : index
      %c0_15 = arith.constant 0 : index
      %20 = vector.load %arg5[%c0_14, %c0_15] : memref<8x8xf32, #tpu.memory_space<vmem>>, vector<8x8xf32>
      tpu.vector_store %arg5[%c0_14, %c0_15], %19 {strides = array<i32>} : memref<8x8xf32, #tpu.memory_space<vmem>>, vector<8x8xf32>,
      %21 = vector.shape_cast %17 : vector<1x8xf32> to vector<1x8xf32>
      %22 = vector.broadcast %21 : vector<1x8xf32> to vector<8x8xf32>
      %c0_16 = arith.constant 0 : index
      %c0_17 = arith.constant 0 : index
      %23 = vector.load %arg6[%c0_16, %c0_17] : memref<8x8xf32, #tpu.memory_space<vmem>>, vector<8x8xf32>
      tpu.vector_store %arg6[%c0_16, %c0_17], %22 {strides = array<i32>} : memref<8x8xf32, #tpu.memory_space<vmem>>, vector<8x8xf32>,
    } else {
    }
    return
  }
  func.func @transform_0(%arg0: i32, %arg1: i32) -> (i32, i32) {
    %c0_i32 = arith.constant 0 : i32
    return %arg0, %arg1 : i32, i32
  }
  func.func @transform_1(%arg0: i32, %arg1: i32) -> (i32, i32) {
    %c0_i32 = arith.constant 0 : i32
    %c0_i32_0 = arith.constant 0 : i32
    %c0_i32_1 = arith.constant 0 : i32
    return %c0_i32, %c0_i32_0 : i32, i32
  }
  func.func @transform_2(%arg0: i32, %arg1: i32) -> (i32, i32) {
    %c0_i32 = arith.constant 0 : i32
    %c0_i32_0 = arith.constant 0 : i32
    return %arg0, %c0_i32 : i32, i32
  }
  func.func @transform_3(%arg0: i32, %arg1: i32) -> (i32, i32) {
    %c0_i32 = arith.constant 0 : i32
    %c0_i32_0 = arith.constant 0 : i32
    return %arg0, %c0_i32 : i32, i32
  }
  func.func @transform_4(%arg0: i32, %arg1: i32) -> (i32, i32) {
    %c0_i32 = arith.constant 0 : i32
    %c0_i32_0 = arith.constant 0 : i32
    return %arg0, %c0_i32 : i32, i32
  }
}

</mosaic_0001>

<bundles_post_ra>
// kernel: tpu_custom_call.1
= control target key start
LH: loop header
LB: loop body
LE: loop exit
PB: predicated region body
PF: predicated region fallthrough
CT: control target
= control target key end

     0   :  { %10 = vsyncpa [#allocation3], 0  ;;  %vm218_vm0 = vcmask 293888   ;;  %vm20_vm1 = vcmask 64512   ;;  %v1665_v7 = vmov 0.0   ;;  %vm411_vm2 = vcmask 1043456   ;;  %s3171_s0 = inlined_call_operand.vmem [shape: f32[512,36], index: 0, kind: input, shape index: {}]   ;;  %s3172_s1 = inlined_call_operand.vmem [shape: f32[36,8], index: 1, kind: input, shape index: {}]   ;;  %s3173_s2 = inlined_call_operand.vmem [shape: f32[512,8], index: 2, kind: output, shape index: {0}]   ;;  %s3174_s3 = inlined_call_operand.hbm [shape: f32[8,8], index: 3, kind: output, shape index: {1}]   ;;  %s3175_s4 = inlined_call_operand.hbm [shape: f32[8,8], index: 4, kind: output, shape index: {2}]  }
   0x1   :  { %v213_v0 = vld [vmem:[%s3172_s1] sm:$0xff]  ;;  %v214_v1 = vld [vmem:[%s3172_s1 + $0x8] sm:$0xff]  ;;  %v215_v2 = vld [vmem:[%s3172_s1 + $0x10] sm:$0xff]  ;;  %22 = vst.msk [vmem:[%s3173_s2 + $0x8] sm:$0xff] %vm20_vm1, %v1665_v7 }
   0x2   :  { %v1702_v3 = vpack.c.bf16 %v214_v1, %v213_v0  ;;  %v216_v4 = vld [vmem:[%s3172_s1 + $0x18] sm:$0xff]  ;;  %v149_v5 = vld [vmem:[%s3171_s0] sm:$0xff]  ;;  %21 = vst.msk [vmem:[%s3173_s2] sm:$0xff] %vm20_vm1, %v1665_v7  ;;  %23 = vst.msk [vmem:[%s3173_s2 + $0x10] sm:$0xff] %vm20_vm1, %v1665_v7 }
   0x3   :  { %v1710_v6 = vpack.c.bf16 %v216_v4, %v215_v2  ;;  %1504 = vmatprep.mubr.msk.f32.mxu0 %vm218_vm0, %v149_v5  ;;  %24 = vst.msk [vmem:[%s3173_s2 + $0x18] sm:$0xff] %vm20_vm1, %v1665_v7  ;;  %25 = vst.msk [vmem:[%s3173_s2 + $0x20] sm:$0xff] %vm20_vm1, %v1665_v7  ;;  %v217_v8 = vld [vmem:[%s3172_s1 + $0x20] sm:$0xf]  ;;  %v150_v9 = vld [vmem:[%s3171_s0 + $0x8] sm:$0xff] }
   0x4   :  { %26 = vst.msk [vmem:[%s3173_s2 + $0x28] sm:$0xff] %vm20_vm1, %v1665_v7  ;;  %27 = vst.msk [vmem:[%s3173_s2 + $0x30] sm:$0xff] %vm20_vm1, %v1665_v7  ;;  %1601 = vmatprep.subr.bf16.mxu0 %v1702_v3  ;;  %1608 = vmatprep.subr.bf16.mxu1 %v1702_v3  ;;  %v151_v10 = vld [vmem:[%s3171_s0 + $0x10] sm:$0xff]  ;;  %v181_v11 = vld [vmem:[%s3171_s0 + $0x100] sm:$0xff] }
   0x5   :  { %28 = vst.msk [vmem:[%s3173_s2 + $0x38] sm:$0xff] %vm20_vm1, %v1665_v7  ;;  %29 = vst.msk [vmem:[%s3173_s2 + $0x40] sm:$0xff] %vm20_vm1, %v1665_v7  ;;  %1603 = vmatpush3.bf16.msra.mxu0 %v1702_v3  ;;  %1611 = vmatpush3.bf16.msra.mxu1 %v1702_v3  ;;  %v182_v12 = vld [vmem:[%s3171_s0 + $0x108] sm:$0xff]  ;;  %v183_v13 = vld [vmem:[%s3171_s0 + $0x110] sm:$0xff] }
   0x6   :  { %30 = vst.msk [vmem:[%s3173_s2 + $0x48] sm:$0xff] %vm20_vm1, %v1665_v7  ;;  %31 = vst.msk [vmem:[%s3173_s2 + $0x50] sm:$0xff] %vm20_vm1, %v1665_v7  ;;  %1605 = vmatprep.subr.bf16.mxu0 %v1710_v6  ;;  %1609 = vmatprep.subr.bf16.mxu1 %v1710_v6  ;;  %v152_v14 = vld [vmem:[%s3171_s0 + $0x18] sm:$0xff]  ;;  %v153_v15 = vld [vmem:[%s3171_s0 + $0x20] sm:$0xff] }
   0x7   :  { %32 = vst.msk [vmem:[%s3173_s2 + $0x58] sm:$0xff] %vm20_vm1, %v1665_v7  ;;  %33 = vst.msk [vmem:[%s3173_s2 + $0x60] sm:$0xff] %vm20_vm1, %v1665_v7  ;;  %1552 = vmatprep.mubr.msk.f32.mxu1 %vm218_vm0, %v181_v11  ;;  %v184_v16 = vld [vmem:[%s3171_s0 + $0x118] sm:$0xff]  ;;  %v185_v17 = vld [vmem:[%s3171_s0 + $0x120] sm:$0xff] }
   0x8   :  { %34 = vst.msk [vmem:[%s3173_s2 + $0x68] sm:$0xff] %vm20_vm1, %v1665_v7  ;;  %35 = vst.msk [vmem:[%s3173_s2 + $0x70] sm:$0xff] %vm20_vm1, %v1665_v7  ;;  %v154_v18 = vld [vmem:[%s3171_s0 + $0x28] sm:$0xff]  ;;  %v155_v19 = vld [vmem:[%s3171_s0 + $0x30] sm:$0xff] }
   0x9   :  { %36 = vst.msk [vmem:[%s3173_s2 + $0x78] sm:$0xff] %vm20_vm1, %v1665_v7  ;;  %37 = vst.msk [vmem:[%s3173_s2 + $0x80] sm:$0xff] %vm20_vm1, %v1665_v7  ;;  %1607 = vmatpush3.bf16.msra.mxu0 %v1710_v6  ;;  %1612 = vmatpush3.bf16.msra.mxu1 %v1710_v6  ;;  %v186_v20 = vld [vmem:[%s3171_s0 + $0x128] sm:$0xff]  ;;  %v187_v21 = vld [vmem:[%s3171_s0 + $0x130] sm:$0xff] }
   0xa   :  { %38 = vst.msk [vmem:[%s3173_s2 + $0x88] sm:$0xff] %vm20_vm1, %v1665_v7  ;;  %39 = vst.msk [vmem:[%s3173_s2 + $0x90] sm:$0xff] %vm20_vm1, %v1665_v7  ;;  %1502 = vmatprep.subr.msk.mxu0 %vm411_vm2, %v217_v8  ;;  %1610 = vmatprep.subr.msk.mxu1 %vm411_vm2, %v217_v8  ;;  %v156_v22 = vld [vmem:[%s3171_s0 + $0x38] sm:$0xff]  ;;  %v157_v23 = vld [vmem:[%s3171_s0 + $0x40] sm:$0xff] }
   0xb   :  { %40 = vst.msk [vmem:[%s3173_s2 + $0x98] sm:$0xff] %vm20_vm1, %v1665_v7  ;;  %41 = vst.msk [vmem:[%s3173_s2 + $0xa0] sm:$0xff] %vm20_vm1, %v1665_v7  ;;  %v188_v24 = vld [vmem:[%s3171_s0 + $0x138] sm:$0xff] }
   0xc   :  { %42 = vst.msk [vmem:[%s3173_s2 + $0xa8] sm:$0xff] %vm20_vm1, %v1665_v7  ;;  %43 = vst.msk [vmem:[%s3173_s2 + $0xb0] sm:$0xff] %vm20_vm1, %v1665_v7 }
   0xd   :  { %44 = vst.msk [vmem:[%s3173_s2 + $0xb8] sm:$0xff] %vm20_vm1, %v1665_v7  ;;  %45 = vst.msk [vmem:[%s3173_s2 + $0xc0] sm:$0xff] %vm20_vm1, %v1665_v7  ;;  %1503 = vmatpush3.msk.msra.mxu0 %vm411_vm2, %v217_v8  ;;  %1613 = vmatpush3.msk.msra.mxu1 %vm411_vm2, %v217_v8 }
   0xe   :  { %46 = vst.msk [vmem:[%s3173_s2 + $0xc8] sm:$0xff] %vm20_vm1, %v1665_v7  ;;  %47 = vst.msk [vmem:[%s3173_s2 + $0xd0] sm:$0xff] %vm20_vm1, %v1665_v7  ;;  %1505 = vmatmul.mubr.msk.f32.vlgmr.msra.gmra.mrb[0].mxu0 %vm218_vm0, %v150_v9  ;;  %1553 = vmatmul.mubr.msk.f32.vlgmr.msra.gmra.mrb[0].mxu1 %vm218_vm0, %v182_v12 }
   0xf   :  { %48 = vst.msk [vmem:[%s3173_s2 + $0xd8] sm:$0xff] %vm20_vm1, %v1665_v7  ;;  %49 = vst.msk [vmem:[%s3173_s2 + $0xe0] sm:$0xff] %vm20_vm1, %v1665_v7  ;;  %1507 = vmatprep.mubr.msk.f32.mxu0 %vm218_vm0, %v151_v10  ;;  %1555 = vmatprep.mubr.msk.f32.mxu1 %vm218_vm0, %v183_v13 }
  0x10   :  { %50 = vst.msk [vmem:[%s3173_s2 + $0xe8] sm:$0xff] %vm20_vm1, %v1665_v7  ;;  %51 = vst.msk [vmem:[%s3173_s2 + $0xf0] sm:$0xff] %vm20_vm1, %v1665_v7 }
  0x11   :  { %52 = vst.msk [vmem:[%s3173_s2 + $0xf8] sm:$0xff] %vm20_vm1, %v1665_v7  ;;  %53 = vst.msk [vmem:[%s3173_s2 + $0x100] sm:$0xff] %vm20_vm1, %v1665_v7 }
  0x12   :  { %54 = vst.msk [vmem:[%s3173_s2 + $0x108] sm:$0xff] %vm20_vm1, %v1665_v7  ;;  %55 = vst.msk [vmem:[%s3173_s2 + $0x110] sm:$0xff] %vm20_vm1, %v1665_v7  ;;  %1508 = vmatmul.mubr.msk.f32.gmra.mrb[2].mxu0 %vm218_vm0, %v152_v14  ;;  %1556 = vmatmul.mubr.msk.f32.gmra.mrb[2].mxu1 %vm218_vm0, %v184_v16 }
  0x13   :  { %56 = vst.msk [vmem:[%s3173_s2 + $0x118] sm:$0xff] %vm20_vm1, %v1665_v7  ;;  %57 = vst.msk [vmem:[%s3173_s2 + $0x120] sm:$0xff] %vm20_vm1, %v1665_v7  ;;  %1510 = vmatprep.mubr.msk.f32.mxu0 %vm218_vm0, %v153_v15  ;;  %1558 = vmatprep.mubr.msk.f32.mxu1 %vm218_vm0, %v185_v17 }
  0x14   :  { %58 = vst.msk [vmem:[%s3173_s2 + $0x128] sm:$0xff] %vm20_vm1, %v1665_v7  ;;  %59 = vst.msk [vmem:[%s3173_s2 + $0x130] sm:$0xff] %vm20_vm1, %v1665_v7 }
  0x15   :  { %60 = vst.msk [vmem:[%s3173_s2 + $0x138] sm:$0xff] %vm20_vm1, %v1665_v7  ;;  %61 = vst.msk [vmem:[%s3173_s2 + $0x140] sm:$0xff] %vm20_vm1, %v1665_v7 }
  0x16   :  { %62 = vst.msk [vmem:[%s3173_s2 + $0x148] sm:$0xff] %vm20_vm1, %v1665_v7  ;;  %63 = vst.msk [vmem:[%s3173_s2 + $0x150] sm:$0xff] %vm20_vm1, %v1665_v7  ;;  %1511 = vmatmul.mubr.msk.f32.gmra.mrb[4].mxu0 %vm218_vm0, %v154_v18  ;;  %1559 = vmatmul.mubr.msk.f32.gmra.mrb[4].mxu1 %vm218_vm0, %v186_v20 }
  0x17   :  { %64 = vst.msk [vmem:[%s3173_s2 + $0x158] sm:$0xff] %vm20_vm1, %v1665_v7  ;;  %65 = vst.msk [vmem:[%s3173_s2 + $0x160] sm:$0xff] %vm20_vm1, %v1665_v7  ;;  %1513 = vmatprep.mubr.msk.f32.mxu0 %vm218_vm0, %v155_v19  ;;  %1561 = vmatprep.mubr.msk.f32.mxu1 %vm218_vm0, %v187_v21 }
  0x18   :  { %66 = vst.msk [vmem:[%s3173_s2 + $0x168] sm:$0xff] %vm20_vm1, %v1665_v7  ;;  %67 = vst.msk [vmem:[%s3173_s2 + $0x170] sm:$0xff] %vm20_vm1, %v1665_v7 }
  0x19   :  { %68 = vst.msk [vmem:[%s3173_s2 + $0x178] sm:$0xff] %vm20_vm1, %v1665_v7  ;;  %69 = vst.msk [vmem:[%s3173_s2 + $0x180] sm:$0xff] %vm20_vm1, %v1665_v7 }
  0x1a   :  { %70 = vst.msk [vmem:[%s3173_s2 + $0x188] sm:$0xff] %vm20_vm1, %v1665_v7  ;;  %71 = vst.msk [vmem:[%s3173_s2 + $0x190] sm:$0xff] %vm20_vm1, %v1665_v7 }
  0x1b   :  { %72 = vst.msk [vmem:[%s3173_s2 + $0x198] sm:$0xff] %vm20_vm1, %v1665_v7  ;;  %73 = vst.msk [vmem:[%s3173_s2 + $0x1a0] sm:$0xff] %vm20_vm1, %v1665_v7 }
  0x1c   :  { %74 = vst.msk [vmem:[%s3173_s2 + $0x1a8] sm:$0xff] %vm20_vm1, %v1665_v7  ;;  %75 = vst.msk [vmem:[%s3173_s2 + $0x1b0] sm:$0xff] %vm20_vm1, %v1665_v7 }
  0x1d   :  { %76 = vst.msk [vmem:[%s3173_s2 + $0x1b8] sm:$0xff] %vm20_vm1, %v1665_v7  ;;  %77 = vst.msk [vmem:[%s3173_s2 + $0x1c0] sm:$0xff] %vm20_vm1, %v1665_v7 }
  0x1e   :  { %78 = vst.msk [vmem:[%s3173_s2 + $0x1c8] sm:$0xff] %vm20_vm1, %v1665_v7  ;;  %79 = vst.msk [vmem:[%s3173_s2 + $0x1d0] sm:$0xff] %vm20_vm1, %v1665_v7 }
  0x1f   :  { %80 = vst.msk [vmem:[%s3173_s2 + $0x1d8] sm:$0xff] %vm20_vm1, %v1665_v7  ;;  %81 = vst.msk [vmem:[%s3173_s2 + $0x1e0] sm:$0xff] %vm20_vm1, %v1665_v7 }
  0x20   :  { %82 = vst.msk [vmem:[%s3173_s2 + $0x1e8] sm:$0xff] %vm20_vm1, %v1665_v7  ;;  %83 = vst.msk [vmem:[%s3173_s2 + $0x1f0] sm:$0xff] %vm20_vm1, %v1665_v7 }
  0x21   :  { %84 = vst.msk [vmem:[%s3173_s2 + $0x1f8] sm:$0xff] %vm20_vm1, %v1665_v7 }
  0x22   :  { %11 = vsyncpa [#allocation5], 0  ;;  %v189_v25 = vld [vmem:[%s3171_s0 + $0x140] sm:$0xff]  ;;  %1514 = vmatmul.mubr.msk.f32.gmra.mrb[6].mxu0 %vm218_vm0, %v156_v22  ;;  %v158_v26 = vld [vmem:[%s3171_s0 + $0x48] sm:$0xff]  ;;  %1562 = vmatmul.mubr.msk.f32.gmra.mrb[6].mxu1 %vm218_vm0, %v188_v24  ;;  %s1667_s9 = smov [#allocation4]  }
  0x23   :  { %1516 = vmatprep.mubr.msk.f32.mxu0 %vm218_vm0, %v157_v23  ;;  %v159_v27 = vld [vmem:[%s3171_s0 + $0x50] sm:$0xff]  ;;  %1564 = vmatprep.mubr.msk.f32.mxu1 %vm218_vm0, %v189_v25  ;;  %v190_v28 = vld [vmem:[%s3171_s0 + $0x148] sm:$0xff]  ;;  %v160_v30 = vld [vmem:[%s3171_s0 + $0x58] sm:$0xff]  ;;  %s1346_s10 = sshll.u32 %s1667_s9, 4  ;;  %s1347_s10 = int_to_ptr.vmem [resolvable:$true] %s1346_s10 }
  0x24   :  { %v191_v29 = vld [vmem:[%s3171_s0 + $0x150] sm:$0xff]  ;;  %v161_v31 = vld [vmem:[%s3171_s0 + $0x60] sm:$0xff]  ;;  %v192_v32 = vld [vmem:[%s3171_s0 + $0x158] sm:$0xff] }
  0x25   :  { %v193_v33 = vld [vmem:[%s3171_s0 + $0x160] sm:$0xff]  ;;  %v162_v34 = vld [vmem:[%s3171_s0 + $0x68] sm:$0xff]  ;;  %v163_v35 = vld [vmem:[%s3171_s0 + $0x70] sm:$0xff] }
  0x26   :  { %1517 = vmatmul.mubr.msk.f32.gmra.mrb[8].mxu0 %vm218_vm0, %v158_v26  ;;  %1565 = vmatmul.mubr.msk.f32.gmra.mrb[8].mxu1 %vm218_vm0, %v190_v28  ;;  %v194_v36 = vld [vmem:[%s3171_s0 + $0x168] sm:$0xff]  ;;  %v195_v37 = vld [vmem:[%s3171_s0 + $0x170] sm:$0xff]  ;;  %v164_v38 = vld [vmem:[%s3171_s0 + $0x78] sm:$0xff] }
  0x27   :  { %1519 = vmatprep.mubr.msk.f32.mxu0 %vm218_vm0, %v159_v27  ;;  %1567 = vmatprep.mubr.msk.f32.mxu1 %vm218_vm0, %v191_v29  ;;  %v165_v39 = vld [vmem:[%s3171_s0 + $0x80] sm:$0xff]  ;;  %v196_v40 = vld [vmem:[%s3171_s0 + $0x178] sm:$0xff]  ;;  %v166_v42 = vld [vmem:[%s3171_s0 + $0x88] sm:$0xff] }
  0x28   :  { %v197_v41 = vld [vmem:[%s3171_s0 + $0x180] sm:$0xff]  ;;  %v167_v43 = vld [vmem:[%s3171_s0 + $0x90] sm:$0xff]  ;;  %v198_v44 = vld [vmem:[%s3171_s0 + $0x188] sm:$0xff] }
  0x29   :  { %v199_v45 = vld [vmem:[%s3171_s0 + $0x190] sm:$0xff]  ;;  %v168_v46 = vld [vmem:[%s3171_s0 + $0x98] sm:$0xff]  ;;  %v169_v47 = vld [vmem:[%s3171_s0 + $0xa0] sm:$0xff] }
  0x2a   :  { %1520 = vmatmul.mubr.msk.f32.gmra.mrb[10].mxu0 %vm218_vm0, %v160_v30  ;;  %1568 = vmatmul.mubr.msk.f32.gmra.mrb[10].mxu1 %vm218_vm0, %v192_v32  ;;  %v200_v48 = vld [vmem:[%s3171_s0 + $0x198] sm:$0xff]  ;;  %v201_v49 = vld [vmem:[%s3171_s0 + $0x1a0] sm:$0xff]  ;;  %v170_v50 = vld [vmem:[%s3171_s0 + $0xa8] sm:$0xff] }
  0x2b   :  { %1522 = vmatprep.mubr.msk.f32.mxu0 %vm218_vm0, %v161_v31  ;;  %1570 = vmatprep.mubr.msk.f32.mxu1 %vm218_vm0, %v193_v33  ;;  %v171_v51 = vld [vmem:[%s3171_s0 + $0xb0] sm:$0xff]  ;;  %v202_v52 = vld [vmem:[%s3171_s0 + $0x1a8] sm:$0xff]  ;;  %v172_v54 = vld [vmem:[%s3171_s0 + $0xb8] sm:$0xff] }
  0x2c   :  { %v203_v53 = vld [vmem:[%s3171_s0 + $0x1b0] sm:$0xff]  ;;  %v173_v55 = vld [vmem:[%s3171_s0 + $0xc0] sm:$0xff]  ;;  %v204_v56 = vld [vmem:[%s3171_s0 + $0x1b8] sm:$0xff] }
  0x2d   :  { %v205_v57 = vld [vmem:[%s3171_s0 + $0x1c0] sm:$0xff]  ;;  %v174_v58 = vld [vmem:[%s3171_s0 + $0xc8] sm:$0xff]  ;;  %v175_v59 = vld [vmem:[%s3171_s0 + $0xd0] sm:$0xff] }
  0x2e   :  { %1523 = vmatmul.mubr.msk.f32.gmra.mrb[12].mxu0 %vm218_vm0, %v162_v34  ;;  %1571 = vmatmul.mubr.msk.f32.gmra.mrb[12].mxu1 %vm218_vm0, %v194_v36  ;;  %v206_v60 = vld [vmem:[%s3171_s0 + $0x1c8] sm:$0xff]  ;;  %v207_v61 = vld [vmem:[%s3171_s0 + $0x1d0] sm:$0xff]  ;;  %v176_v62 = vld [vmem:[%s3171_s0 + $0xd8] sm:$0xff] }
  0x2f   :  { %1525 = vmatprep.mubr.msk.f32.mxu0 %vm218_vm0, %v163_v35  ;;  %1573 = vmatprep.mubr.msk.f32.mxu1 %vm218_vm0, %v195_v37  ;;  %v177_v63 = vld [vmem:[%s3171_s0 + $0xe0] sm:$0xff]  ;;  %v208_v0 = vld [vmem:[%s3171_s0 + $0x1d8] sm:$0xff]  ;;  %v178_v2 = vld [vmem:[%s3171_s0 + $0xe8] sm:$0xff] }
  0x30   :  { %v209_v1 = vld [vmem:[%s3171_s0 + $0x1e0] sm:$0xff]  ;;  %v179_v3 = vld [vmem:[%s3171_s0 + $0xf0] sm:$0xff]  ;;  %v210_v4 = vld [vmem:[%s3171_s0 + $0x1e8] sm:$0xff] }
  0x31   :  { %v211_v5 = vld [vmem:[%s3171_s0 + $0x1f0] sm:$0xff]  ;;  %v180_v6 = vld [vmem:[%s3171_s0 + $0xf8] sm:$0xff]  ;;  %v86_v8 = vld [vmem:[%s3173_s2 + $0x8] sm:$0xff] }
  0x32   :  { %1526 = vmatmul.mubr.msk.f32.gmra.mrb[14].mxu0 %vm218_vm0, %v164_v38  ;;  %1574 = vmatmul.mubr.msk.f32.gmra.mrb[14].mxu1 %vm218_vm0, %v196_v40  ;;  %v212_v7 = vld [vmem:[%s3171_s0 + $0x1f8] sm:$0xff]  ;;  %v85_v9 = vld [vmem:[%s3173_s2] sm:$0xff]  ;;  %v118_v10 = vld [vmem:[%s3173_s2 + $0x108] sm:$0xff] }
  0x33   :  { %1528 = vmatprep.mubr.msk.f32.mxu0 %vm218_vm0, %v165_v39  ;;  %1576 = vmatprep.mubr.msk.f32.mxu1 %vm218_vm0, %v197_v41  ;;  %v117_v12 = vld [vmem:[%s3173_s2 + $0x100] sm:$0xff]  ;;  %v88_v17 = vld [vmem:[%s3173_s2 + $0x18] sm:$0xff]  ;;  %v87_v20 = vld [vmem:[%s3173_s2 + $0x10] sm:$0xff] }
  0x34   :  { %v120_v22 = vld [vmem:[%s3173_s2 + $0x118] sm:$0xff]  ;;  %v119_v24 = vld [vmem:[%s3173_s2 + $0x110] sm:$0xff]  ;;  %v90_v29 = vld [vmem:[%s3173_s2 + $0x28] sm:$0xff] }
  0x35   :  { %v89_v32 = vld [vmem:[%s3173_s2 + $0x20] sm:$0xff]  ;;  %v122_v34 = vld [vmem:[%s3173_s2 + $0x128] sm:$0xff] }
  0x36   :  { %1529 = vmatmul.mubr.msk.f32.gmra.mrb[16].mxu0 %vm218_vm0, %v166_v42  ;;  %1577 = vmatmul.mubr.msk.f32.gmra.mrb[16].mxu1 %vm218_vm0, %v198_v44  ;;  %v121_v36 = vld [vmem:[%s3173_s2 + $0x120] sm:$0xff]  ;;  %v92_v42 = vld [vmem:[%s3173_s2 + $0x38] sm:$0xff] }
  0x37   :  { %1531 = vmatprep.mubr.msk.f32.mxu0 %vm218_vm0, %v167_v43  ;;  %1579 = vmatprep.mubr.msk.f32.mxu1 %vm218_vm0, %v199_v45 }
  0x3a   :  { %1532 = vmatmul.mubr.msk.f32.gmra.mrb[18].mxu0 %vm218_vm0, %v168_v46  ;;  %1580 = vmatmul.mubr.msk.f32.gmra.mrb[18].mxu1 %vm218_vm0, %v200_v48 }
  0x3b   :  { %1534 = vmatprep.mubr.msk.f32.mxu0 %vm218_vm0, %v169_v47  ;;  %1582 = vmatprep.mubr.msk.f32.mxu1 %vm218_vm0, %v201_v49  ;;  %v91_v47 = vld [vmem:[%s3173_s2 + $0x30] sm:$0xff] }
  0x3e   :  { %1535 = vmatmul.mubr.msk.f32.gmra.mrb[20].mxu0 %vm218_vm0, %v170_v50  ;;  %1583 = vmatmul.mubr.msk.f32.gmra.mrb[20].mxu1 %vm218_vm0, %v202_v52 }
  0x3f   :  { %1537 = vmatprep.mubr.msk.f32.mxu0 %vm218_vm0, %v171_v51  ;;  %1585 = vmatprep.mubr.msk.f32.mxu1 %vm218_vm0, %v203_v53  ;;  %v124_v53 = vld [vmem:[%s3173_s2 + $0x138] sm:$0xff] }
  0x42   :  { %1538 = vmatmul.mubr.msk.f32.gmra.mrb[22].mxu0 %vm218_vm0, %v172_v54  ;;  %1586 = vmatmul.mubr.msk.f32.gmra.mrb[22].mxu1 %vm218_vm0, %v204_v56 }
  0x43   :  { %1540 = vmatprep.mubr.msk.f32.mxu0 %vm218_vm0, %v173_v55  ;;  %1588 = vmatprep.mubr.msk.f32.mxu1 %vm218_vm0, %v205_v57 }
  0x46   :  { %1541 = vmatmul.mubr.msk.f32.gmra.mrb[24].mxu0 %vm218_vm0, %v174_v58  ;;  %1589 = vmatmul.mubr.msk.f32.gmra.mrb[24].mxu1 %vm218_vm0, %v206_v60 }
  0x47   :  { %1543 = vmatprep.mubr.msk.f32.mxu0 %vm218_vm0, %v175_v59  ;;  %1591 = vmatprep.mubr.msk.f32.mxu1 %vm218_vm0, %v207_v61  ;;  %v94_v61 = vld [vmem:[%s3173_s2 + $0x48] sm:$0xff] }
  0x4a   :  { %1544 = vmatmul.mubr.msk.f32.gmra.mrb[26].mxu0 %vm218_vm0, %v176_v62  ;;  %1592 = vmatmul.mubr.msk.f32.gmra.mrb[26].mxu1 %vm218_vm0, %v208_v0 }
  0x4b   :  { %1546 = vmatprep.mubr.msk.f32.mxu0 %vm218_vm0, %v177_v63  ;;  %1594 = vmatprep.mubr.msk.f32.mxu1 %vm218_vm0, %v209_v1  ;;  %v93_v1 = vld [vmem:[%s3173_s2 + $0x40] sm:$0xff] }
  0x4e   :  { %1547 = vmatmul.mubr.msk.f32.gmra.mrb[28].mxu0 %vm218_vm0, %v178_v2  ;;  %1595 = vmatmul.mubr.msk.f32.gmra.mrb[28].mxu1 %vm218_vm0, %v210_v4 }
  0x4f   :  { %1549 = vmatprep.mubr.msk.f32.mxu0 %vm218_vm0, %v179_v3  ;;  %1597 = vmatprep.mubr.msk.f32.mxu1 %vm218_vm0, %v211_v5 }
  0x52   :  { %1550 = vmatmul.mubr.msk.f32.gmra.mrb[30].mxu0 %vm218_vm0, %v180_v6  ;;  %1598 = vmatmul.mubr.msk.f32.gmra.mrb[30].mxu1 %vm218_vm0, %v212_v7 }
  0xe1   :  { %v1506_v11 = vpop.f32.mrb[0].mxu0  ;;  %v1554_v15 = vpop.f32.mrb[0].mxu1 }
  0xe2   :  { %v801_v13 = vadd.f32 %v1506_v11, %v86_v8  ;;  %v481_v14 = vpop.f32.mrb[1].mxu0  ;;  %v833_v18 = vadd.f32 %v1554_v15, %v118_v10  ;;  %v641_v19 = vpop.f32.mrb[1].mxu1 }
  0xe3   :  { %v800_v16 = vadd.f32 %v481_v14, %v85_v9  ;;  %v832_v21 = vadd.f32 %v641_v19, %v117_v12 }
  0xe4   :  { %866 = vst.msk [vmem:[%s3173_s2 + $0x8] sm:$0xff] %vm20_vm1, %v801_v13  ;;  %898 = vst.msk [vmem:[%s3173_s2 + $0x108] sm:$0xff] %vm20_vm1, %v833_v18 }
  0xe5   :  { %865 = vst.msk [vmem:[%s3173_s2] sm:$0xff] %vm20_vm1, %v800_v16  ;;  %v1509_v23 = vpop.f32.mrb[2].mxu0  ;;  %897 = vst.msk [vmem:[%s3173_s2 + $0x100] sm:$0xff] %vm20_vm1, %v832_v21  ;;  %v1557_v27 = vpop.f32.mrb[2].mxu1  ;;  %v96_v16 = vld [vmem:[%s3173_s2 + $0x58] sm:$0xff]  ;;  %v95_v21 = vld [vmem:[%s3173_s2 + $0x50] sm:$0xff] }
  0xe6   :  { %v803_v25 = vadd.f32 %v1509_v23, %v88_v17  ;;  %v491_v26 = vpop.f32.mrb[3].mxu0  ;;  %v835_v30 = vadd.f32 %v1557_v27, %v120_v22  ;;  %v651_v31 = vpop.f32.mrb[3].mxu1 }
  0xe7   :  { %v802_v28 = vadd.f32 %v491_v26, %v87_v20  ;;  %v834_v33 = vadd.f32 %v651_v31, %v119_v24 }
  0xe8   :  { %868 = vst.msk [vmem:[%s3173_s2 + $0x18] sm:$0xff] %vm20_vm1, %v803_v25  ;;  %900 = vst.msk [vmem:[%s3173_s2 + $0x118] sm:$0xff] %vm20_vm1, %v835_v30 }
  0xe9   :  { %867 = vst.msk [vmem:[%s3173_s2 + $0x10] sm:$0xff] %vm20_vm1, %v802_v28  ;;  %v1512_v35 = vpop.f32.mrb[4].mxu0  ;;  %899 = vst.msk [vmem:[%s3173_s2 + $0x110] sm:$0xff] %vm20_vm1, %v834_v33  ;;  %v1560_v39 = vpop.f32.mrb[4].mxu1 }
  0xea   :  { %v805_v37 = vadd.f32 %v1512_v35, %v90_v29  ;;  %v501_v38 = vpop.f32.mrb[5].mxu0  ;;  %v837_v43 = vadd.f32 %v1560_v39, %v122_v34  ;;  %v661_v44 = vpop.f32.mrb[5].mxu1 }
  0xeb   :  { %v933_v40 = vld [vmem:[%s3173_s2 + $0x8] sm:$0xff]  ;;  %v804_v41 = vadd.f32 %v501_v38, %v89_v32  ;;  %v836_v48 = vadd.f32 %v661_v44, %v121_v36 }
  0xec   :  { %v1130_v45 = vmul.f32 %v933_v40, %v933_v40  ;;  %v932_v46 = vld [vmem:[%s3173_s2] sm:$0xff]  ;;  %870 = vst.msk [vmem:[%s3173_s2 + $0x28] sm:$0xff] %vm20_vm1, %v805_v37  ;;  %v997_v49 = vsel %vm20_vm1, %v933_v40, 0.0  ;;  %902 = vst.msk [vmem:[%s3173_s2 + $0x128] sm:$0xff] %vm20_vm1, %v837_v43  ;;  %v98_v36 = vld [vmem:[%s3173_s2 + $0x68] sm:$0xff] }
  0xed   :  { %v996_v50 = vsel %vm20_vm1, %v932_v46, 0.0  ;;  %v1129_v51 = vmul.f32 %v932_v46, %v932_v46  ;;  %869 = vst.msk [vmem:[%s3173_s2 + $0x20] sm:$0xff] %vm20_vm1, %v804_v41  ;;  %901 = vst.msk [vmem:[%s3173_s2 + $0x120] sm:$0xff] %vm20_vm1, %v836_v48  ;;  %v97_v41 = vld [vmem:[%s3173_s2 + $0x60] sm:$0xff] }
  0xee   :  { %v1194_v57 = vsel %vm20_vm1, %v1130_v45, 0.0  ;;  %v998_v63 = vadd.f32 %v997_v49, %v996_v50 }
  0xef   :  { %v1193_v58 = vsel %vm20_vm1, %v1129_v51, 0.0  ;;  %v935_v59 = vld [vmem:[%s3173_s2 + $0x18] sm:$0xff] }
  0xf0   :  { %v934_v0 = vld [vmem:[%s3173_s2 + $0x10] sm:$0xff]  ;;  %v1132_v3 = vmul.f32 %v935_v59, %v935_v59  ;;  %v1195_v7 = vadd.f32 %v1194_v57, %v1193_v58  ;;  %v1001_v12 = vsel %vm20_vm1, %v935_v59, 0.0 }
  0xf1   :  { %v999_v4 = vsel %vm20_vm1, %v934_v0, 0.0  ;;  %v1131_v5 = vmul.f32 %v934_v0, %v934_v0  ;;  %v123_v0 = vld [vmem:[%s3173_s2 + $0x130] sm:$0xff] }
  0xf2   :  { %v1000_v8 = vadd.f32 %v999_v4, %v998_v63  ;;  %v1198_v22 = vsel %vm20_vm1, %v1132_v3, 0.0  ;;  %v99_v63 = vld [vmem:[%s3173_s2 + $0x70] sm:$0xff] }
  0xf3   :  { %v1196_v13 = vsel %vm20_vm1, %v1131_v5, 0.0  ;;  %v937_v14 = vld [vmem:[%s3173_s2 + $0x28] sm:$0xff] }
  0xf4   :  { %v1197_v18 = vadd.f32 %v1196_v13, %v1195_v7  ;;  %v936_v19 = vld [vmem:[%s3173_s2 + $0x20] sm:$0xff]  ;;  %v1002_v20 = vadd.f32 %v1001_v12, %v1000_v8  ;;  %v1134_v23 = vmul.f32 %v937_v14, %v937_v14  ;;  %v1005_v32 = vsel %vm20_vm1, %v937_v14, 0.0 }
  0xf5   :  { %v1515_v52 = vpop.f32.mrb[6].mxu0  ;;  %v1563_v56 = vpop.f32.mrb[6].mxu1  ;;  %v1003_v24 = vsel %vm20_vm1, %v936_v19, 0.0  ;;  %v1133_v25 = vmul.f32 %v936_v19, %v936_v19  ;;  %v101_v19 = vld [vmem:[%s3173_s2 + $0x80] sm:$0xff] }
  0xf6   :  { %v807_v54 = vadd.f32 %v1515_v52, %v92_v42  ;;  %v511_v55 = vpop.f32.mrb[7].mxu0  ;;  %v2405_v62 = vpop.f32.mrb[7].mxu1  ;;  %v839_v2 = vadd.f32 %v1563_v56, %v124_v53  ;;  %v1004_v27 = vadd.f32 %v1003_v24, %v1002_v20  ;;  %v1199_v28 = vadd.f32 %v1198_v22, %v1197_v18  ;;  %v100_v56 = vld [vmem:[%s3173_s2 + $0x78] sm:$0xff]  ;;  %v102_v18 = vld [vmem:[%s3173_s2 + $0x88] sm:$0xff] }
  0xf7   :  { %v806_v60 = vadd.f32 %v511_v55, %v91_v47  ;;  %v1200_v33 = vsel %vm20_vm1, %v1133_v25, 0.0  ;;  %v1202_v42 = vsel %vm20_vm1, %v1134_v23, 0.0  ;;  %v838_v20 = vadd.f32 %v2405_v62, %v123_v0  ;;  %v128_v62 = vld [vmem:[%s3173_s2 + $0x158] sm:$0xff] }
  0xf8   :  { %872 = vst.msk [vmem:[%s3173_s2 + $0x38] sm:$0xff] %vm20_vm1, %v807_v54  ;;  %904 = vst.msk [vmem:[%s3173_s2 + $0x138] sm:$0xff] %vm20_vm1, %v839_v2  ;;  %v1201_v38 = vadd.f32 %v1200_v33, %v1199_v28  ;;  %v1006_v40 = vadd.f32 %v1005_v32, %v1004_v27  ;;  %v127_v27 = vld [vmem:[%s3173_s2 + $0x150] sm:$0xff] }
  0xf9   :  { %871 = vst.msk [vmem:[%s3173_s2 + $0x30] sm:$0xff] %vm20_vm1, %v806_v60  ;;  %v1518_v6 = vpop.f32.mrb[8].mxu0  ;;  %v2426_v11 = vpop.f32.mrb[8].mxu1  ;;  %903 = vst.msk [vmem:[%s3173_s2 + $0x130] sm:$0xff] %vm20_vm1, %v838_v20 }
  0xfa   :  { %v809_v9 = vadd.f32 %v1518_v6, %v94_v61  ;;  %v521_v10 = vpop.f32.mrb[9].mxu0  ;;  %v2436_v17 = vpop.f32.mrb[9].mxu1  ;;  %v1203_v48 = vadd.f32 %v1202_v42, %v1201_v38 }
  0xfb   :  { %v808_v15 = vadd.f32 %v521_v10, %v93_v1  ;;  %v125_v10 = vld [vmem:[%s3173_s2 + $0x140] sm:$0xff] }
  0xfc   :  { %874 = vst.msk [vmem:[%s3173_s2 + $0x48] sm:$0xff] %vm20_vm1, %v809_v9  ;;  %v126_v9 = vld [vmem:[%s3173_s2 + $0x148] sm:$0xff]  ;;  %v840_v33 = vadd.f32 %v2436_v17, %v125_v10 }
  0xfd   :  { %873 = vst.msk [vmem:[%s3173_s2 + $0x40] sm:$0xff] %vm20_vm1, %v808_v15  ;;  %v1521_v26 = vpop.f32.mrb[10].mxu0  ;;  %v2454_v31 = vpop.f32.mrb[10].mxu1  ;;  %v841_v32 = vadd.f32 %v2426_v11, %v126_v9 }
  0xfe   :  { %v811_v29 = vadd.f32 %v1521_v26, %v96_v16  ;;  %v531_v30 = vpop.f32.mrb[11].mxu0  ;;  %v2464_v37 = vpop.f32.mrb[11].mxu1  ;;  %905 = vst.msk [vmem:[%s3173_s2 + $0x140] sm:$0xff] %vm20_vm1, %v840_v33 }
  0xff   :  { %v939_v34 = vld [vmem:[%s3173_s2 + $0x38] sm:$0xff]  ;;  %v810_v35 = vadd.f32 %v531_v30, %v95_v21  ;;  %906 = vst.msk [vmem:[%s3173_s2 + $0x148] sm:$0xff] %vm20_vm1, %v841_v32 }
 0x100   :  { %v938_v39 = vld [vmem:[%s3173_s2 + $0x30] sm:$0xff]  ;;  %876 = vst.msk [vmem:[%s3173_s2 + $0x58] sm:$0xff] %vm20_vm1, %v811_v29  ;;  %v1136_v43 = vmul.f32 %v939_v34, %v939_v34  ;;  %v1009_v52 = vsel %vm20_vm1, %v939_v34, 0.0 }
 0x101   :  { %v1007_v44 = vsel %vm20_vm1, %v938_v39, 0.0  ;;  %v1135_v45 = vmul.f32 %v938_v39, %v938_v39  ;;  %875 = vst.msk [vmem:[%s3173_s2 + $0x50] sm:$0xff] %vm20_vm1, %v810_v35  ;;  %v1524_v46 = vpop.f32.mrb[12].mxu0  ;;  %v2482_v51 = vpop.f32.mrb[12].mxu1 }
 0x102   :  { %v1008_v47 = vadd.f32 %v1007_v44, %v1006_v40  ;;  %v813_v49 = vadd.f32 %v1524_v46, %v98_v36  ;;  %v541_v50 = vpop.f32.mrb[13].mxu0  ;;  %v2492_v57 = vpop.f32.mrb[13].mxu1  ;;  %v1206_v1 = vsel %vm20_vm1, %v1136_v43, 0.0  ;;  %v130_v40 = vld [vmem:[%s3173_s2 + $0x168] sm:$0xff]  ;;  %v104_v44 = vld [vmem:[%s3173_s2 + $0x98] sm:$0xff]  ;;  %v843_v46 = vadd.f32 %v2454_v31, %v128_v62 }
 0x103   :  { %v1204_v53 = vsel %vm20_vm1, %v1135_v45, 0.0  ;;  %v941_v54 = vld [vmem:[%s3173_s2 + $0x48] sm:$0xff]  ;;  %v812_v55 = vadd.f32 %v541_v50, %v97_v41  ;;  %v129_v41 = vld [vmem:[%s3173_s2 + $0x160] sm:$0xff]  ;;  %v103_v45 = vld [vmem:[%s3173_s2 + $0x90] sm:$0xff] }
 0x104   :  { %v1205_v58 = vadd.f32 %v1204_v53, %v1203_v48  ;;  %v1138_v59 = vmul.f32 %v941_v54, %v941_v54  ;;  %v940_v60 = vld [vmem:[%s3173_s2 + $0x40] sm:$0xff]  ;;  %v1010_v61 = vadd.f32 %v1009_v52, %v1008_v47  ;;  %878 = vst.msk [vmem:[%s3173_s2 + $0x68] sm:$0xff] %vm20_vm1, %v813_v49  ;;  %v1013_v13 = vsel %vm20_vm1, %v941_v54, 0.0  ;;  %v132_v31 = vld [vmem:[%s3173_s2 + $0x178] sm:$0xff]  ;;  %908 = vst.msk [vmem:[%s3173_s2 + $0x158] sm:$0xff] %vm20_vm1, %v843_v46 }
 0x105   :  { %v1011_v2 = vsel %vm20_vm1, %v940_v60, 0.0  ;;  %v1137_v3 = vmul.f32 %v940_v60, %v940_v60  ;;  %877 = vst.msk [vmem:[%s3173_s2 + $0x60] sm:$0xff] %vm20_vm1, %v812_v55  ;;  %v1527_v4 = vpop.f32.mrb[14].mxu0  ;;  %v2519_v12 = vpop.f32.mrb[14].mxu1  ;;  %v842_v47 = vadd.f32 %v2464_v37, %v127_v27  ;;  %v131_v37 = vld [vmem:[%s3173_s2 + $0x170] sm:$0xff]  ;;  %v844_v60 = vadd.f32 %v2492_v57, %v129_v41 }
 0x106   :  { %v1012_v5 = vadd.f32 %v1011_v2, %v1010_v61  ;;  %v1207_v6 = vadd.f32 %v1206_v1, %v1205_v58  ;;  %v815_v7 = vadd.f32 %v1527_v4, %v100_v56  ;;  %v551_v8 = vpop.f32.mrb[15].mxu0  ;;  %v2533_v21 = vpop.f32.mrb[15].mxu1  ;;  %v1210_v22 = vsel %vm20_vm1, %v1138_v59, 0.0 }
 0x107   :  { %v1208_v14 = vsel %vm20_vm1, %v1137_v3, 0.0  ;;  %v943_v15 = vld [vmem:[%s3173_s2 + $0x58] sm:$0xff]  ;;  %v814_v16 = vadd.f32 %v551_v8, %v99_v63  ;;  %907 = vst.msk [vmem:[%s3173_s2 + $0x150] sm:$0xff] %vm20_vm1, %v842_v47  ;;  %v845_v59 = vadd.f32 %v2482_v51, %v130_v40  ;;  %v106_v51 = vld [vmem:[%s3173_s2 + $0xa8] sm:$0xff]  ;;  %909 = vst.msk [vmem:[%s3173_s2 + $0x160] sm:$0xff] %vm20_vm1, %v844_v60  ;;  %v847_v57 = vadd.f32 %v2519_v12, %v132_v31 }
 0x108   :  { %v1209_v23 = vadd.f32 %v1208_v14, %v1207_v6  ;;  %v1140_v24 = vmul.f32 %v943_v15, %v943_v15  ;;  %v942_v25 = vld [vmem:[%s3173_s2 + $0x50] sm:$0xff]  ;;  %v1014_v26 = vadd.f32 %v1013_v13, %v1012_v5  ;;  %880 = vst.msk [vmem:[%s3173_s2 + $0x78] sm:$0xff] %vm20_vm1, %v815_v7  ;;  %v1017_v34 = vsel %vm20_vm1, %v943_v15, 0.0  ;;  %v105_v14 = vld [vmem:[%s3173_s2 + $0xa0] sm:$0xff] }
 0x109   :  { %v1015_v28 = vsel %vm20_vm1, %v942_v25, 0.0  ;;  %v1139_v29 = vmul.f32 %v942_v25, %v942_v25  ;;  %879 = vst.msk [vmem:[%s3173_s2 + $0x70] sm:$0xff] %vm20_vm1, %v814_v16  ;;  %v1530_v30 = vpop.f32.mrb[16].mxu0  ;;  %v2567_v42 = vpop.f32.mrb[16].mxu1  ;;  %910 = vst.msk [vmem:[%s3173_s2 + $0x168] sm:$0xff] %vm20_vm1, %v845_v59  ;;  %v846_v7 = vadd.f32 %v2533_v21, %v131_v37  ;;  %v109_v37 = vld [vmem:[%s3173_s2 + $0xc0] sm:$0xff] }
 0x10a   :  { %v1016_v35 = vadd.f32 %v1015_v28, %v1014_v26  ;;  %v1211_v36 = vadd.f32 %v1210_v22, %v1209_v23  ;;  %v817_v38 = vadd.f32 %v1530_v30, %v102_v18  ;;  %v561_v39 = vpop.f32.mrb[17].mxu0  ;;  %v2589_v48 = vpop.f32.mrb[17].mxu1  ;;  %v1214_v49 = vsel %vm20_vm1, %v1140_v24, 0.0  ;;  %912 = vst.msk [vmem:[%s3173_s2 + $0x178] sm:$0xff] %vm20_vm1, %v847_v57  ;;  %v108_v28 = vld [vmem:[%s3173_s2 + $0xb8] sm:$0xff] }
 0x10b   :  { %v1212_v11 = vsel %vm20_vm1, %v1139_v29, 0.0  ;;  %v945_v17 = vld [vmem:[%s3173_s2 + $0x68] sm:$0xff]  ;;  %v816_v43 = vadd.f32 %v561_v39, %v101_v19  ;;  %911 = vst.msk [vmem:[%s3173_s2 + $0x170] sm:$0xff] %vm20_vm1, %v846_v7  ;;  %v112_v57 = vld [vmem:[%s3173_s2 + $0xd8] sm:$0xff] }
 0x10c   :  { %v1213_v50 = vadd.f32 %v1212_v11, %v1211_v36  ;;  %v1142_v52 = vmul.f32 %v945_v17, %v945_v17  ;;  %v944_v53 = vld [vmem:[%s3173_s2 + $0x60] sm:$0xff]  ;;  %v1018_v54 = vadd.f32 %v1017_v34, %v1016_v35  ;;  %882 = vst.msk [vmem:[%s3173_s2 + $0x88] sm:$0xff] %vm20_vm1, %v817_v38  ;;  %v1021_v61 = vsel %vm20_vm1, %v945_v17, 0.0  ;;  %v107_v34 = vld [vmem:[%s3173_s2 + $0xb0] sm:$0xff] }
 0x10d   :  { %v1019_v55 = vsel %vm20_vm1, %v944_v53, 0.0  ;;  %v1141_v56 = vmul.f32 %v944_v53, %v944_v53  ;;  %881 = vst.msk [vmem:[%s3173_s2 + $0x80] sm:$0xff] %vm20_vm1, %v816_v43  ;;  %v1533_v58 = vpop.f32.mrb[18].mxu0  ;;  %v2621_v3 = vpop.f32.mrb[18].mxu1 }
 0x10e   :  { %v1020_v63 = vadd.f32 %v1019_v55, %v1018_v54  ;;  %v1215_v0 = vadd.f32 %v1214_v49, %v1213_v50  ;;  %v819_v1 = vadd.f32 %v1533_v58, %v104_v44  ;;  %v571_v2 = vpop.f32.mrb[19].mxu0  ;;  %v2640_v8 = vpop.f32.mrb[19].mxu1  ;;  %v1218_v12 = vsel %vm20_vm1, %v1142_v52, 0.0  ;;  %v110_v50 = vld [vmem:[%s3173_s2 + $0xc8] sm:$0xff] }
 0x10f   :  { %v1216_v4 = vsel %vm20_vm1, %v1141_v56, 0.0  ;;  %v947_v5 = vld [vmem:[%s3173_s2 + $0x78] sm:$0xff]  ;;  %v818_v6 = vadd.f32 %v571_v2, %v103_v45 }
 0x110   :  { %v1217_v9 = vadd.f32 %v1216_v4, %v1215_v0  ;;  %v946_v10 = vld [vmem:[%s3173_s2 + $0x70] sm:$0xff]  ;;  %v1022_v13 = vadd.f32 %v1021_v61, %v1020_v63  ;;  %884 = vst.msk [vmem:[%s3173_s2 + $0x98] sm:$0xff] %vm20_vm1, %v819_v1  ;;  %v1144_v15 = vmul.f32 %v947_v5, %v947_v5  ;;  %v1025_v25 = vsel %vm20_vm1, %v947_v5, 0.0 }
 0x111   :  { %v1023_v16 = vsel %vm20_vm1, %v946_v10, 0.0  ;;  %v1143_v18 = vmul.f32 %v946_v10, %v946_v10  ;;  %883 = vst.msk [vmem:[%s3173_s2 + $0x90] sm:$0xff] %vm20_vm1, %v818_v6  ;;  %v1536_v19 = vpop.f32.mrb[20].mxu0  ;;  %v2666_v24 = vpop.f32.mrb[20].mxu1 }
 0x112   :  { %v1024_v20 = vadd.f32 %v1023_v16, %v1022_v13  ;;  %v1219_v21 = vadd.f32 %v1218_v12, %v1217_v9  ;;  %v821_v22 = vadd.f32 %v1536_v19, %v106_v51  ;;  %v581_v23 = vpop.f32.mrb[21].mxu0  ;;  %v2676_v29 = vpop.f32.mrb[21].mxu1  ;;  %v1222_v35 = vsel %vm20_vm1, %v1144_v15, 0.0 }
 0x113   :  { %v1220_v26 = vsel %vm20_vm1, %v1143_v18, 0.0  ;;  %v949_v62 = vld [vmem:[%s3173_s2 + $0x88] sm:$0xff]  ;;  %v820_v27 = vadd.f32 %v581_v23, %v105_v14  ;;  %v111_v14 = vld [vmem:[%s3173_s2 + $0xd0] sm:$0xff] }
 0x114   :  { %v1221_v30 = vadd.f32 %v1220_v26, %v1219_v21  ;;  %v948_v32 = vld [vmem:[%s3173_s2 + $0x80] sm:$0xff]  ;;  %v1026_v33 = vadd.f32 %v1025_v25, %v1024_v20  ;;  %886 = vst.msk [vmem:[%s3173_s2 + $0xa8] sm:$0xff] %vm20_vm1, %v821_v22  ;;  %v1146_v36 = vmul.f32 %v949_v62, %v949_v62  ;;  %v1029_v45 = vsel %vm20_vm1, %v949_v62, 0.0 }
 0x115   :  { %v1027_v38 = vsel %vm20_vm1, %v948_v32, 0.0  ;;  %v1145_v39 = vmul.f32 %v948_v32, %v948_v32  ;;  %885 = vst.msk [vmem:[%s3173_s2 + $0xa0] sm:$0xff] %vm20_vm1, %v820_v27  ;;  %v1539_v40 = vpop.f32.mrb[22].mxu0  ;;  %v2694_v44 = vpop.f32.mrb[22].mxu1 }
 0x116   :  { %v1028_v41 = vadd.f32 %v1027_v38, %v1026_v33  ;;  %v1223_v11 = vadd.f32 %v1222_v35, %v1221_v30  ;;  %v823_v17 = vadd.f32 %v1539_v40, %v108_v28  ;;  %v591_v43 = vpop.f32.mrb[23].mxu0  ;;  %v2704_v52 = vpop.f32.mrb[23].mxu1  ;;  %v1226_v55 = vsel %vm20_vm1, %v1146_v36, 0.0  ;;  %v114_v30 = vld [vmem:[%s3173_s2 + $0xe8] sm:$0xff]  ;;  %v113_v36 = vld [vmem:[%s3173_s2 + $0xe0] sm:$0xff] }
 0x117   :  { %v1224_v46 = vsel %vm20_vm1, %v1145_v39, 0.0  ;;  %v951_v47 = vld [vmem:[%s3173_s2 + $0x98] sm:$0xff]  ;;  %v822_v49 = vadd.f32 %v591_v43, %v107_v34 }
 0x118   :  { %v1225_v53 = vadd.f32 %v1224_v46, %v1223_v11  ;;  %v950_v54 = vld [vmem:[%s3173_s2 + $0x90] sm:$0xff]  ;;  %v1030_v31 = vadd.f32 %v1029_v45, %v1028_v41  ;;  %888 = vst.msk [vmem:[%s3173_s2 + $0xb8] sm:$0xff] %vm20_vm1, %v823_v17  ;;  %v1148_v56 = vmul.f32 %v951_v47, %v951_v47  ;;  %v1033_v4 = vsel %vm20_vm1, %v951_v47, 0.0 }
 0x119   :  { %v1031_v58 = vsel %vm20_vm1, %v950_v54, 0.0  ;;  %v1147_v59 = vmul.f32 %v950_v54, %v950_v54  ;;  %887 = vst.msk [vmem:[%s3173_s2 + $0xb0] sm:$0xff] %vm20_vm1, %v822_v49  ;;  %v1542_v60 = vpop.f32.mrb[24].mxu0  ;;  %v2722_v2 = vpop.f32.mrb[24].mxu1 }
 0x11a   :  { %v1032_v61 = vadd.f32 %v1031_v58, %v1030_v31  ;;  %v1227_v63 = vadd.f32 %v1226_v55, %v1225_v53  ;;  %v825_v0 = vadd.f32 %v1542_v60, %v110_v50  ;;  %v601_v1 = vpop.f32.mrb[25].mxu0  ;;  %v2732_v7 = vpop.f32.mrb[25].mxu1  ;;  %v1230_v12 = vsel %vm20_vm1, %v1148_v56, 0.0  ;;  %v116_v31 = vld [vmem:[%s3173_s2 + $0xf8] sm:$0xff] }
 0x11b   :  { %v1228_v5 = vsel %vm20_vm1, %v1147_v59, 0.0  ;;  %v953_v6 = vld [vmem:[%s3173_s2 + $0xa8] sm:$0xff]  ;;  %v824_v51 = vadd.f32 %v601_v1, %v109_v37  ;;  %v115_v59 = vld [vmem:[%s3173_s2 + $0xf0] sm:$0xff] }
 0x11c   :  { %v1229_v9 = vadd.f32 %v1228_v5, %v1227_v63  ;;  %v952_v10 = vld [vmem:[%s3173_s2 + $0xa0] sm:$0xff]  ;;  %v1034_v13 = vadd.f32 %v1033_v4, %v1032_v61  ;;  %890 = vst.msk [vmem:[%s3173_s2 + $0xc8] sm:$0xff] %vm20_vm1, %v825_v0  ;;  %v1150_v15 = vmul.f32 %v953_v6, %v953_v6  ;;  %v1037_v26 = vsel %vm20_vm1, %v953_v6, 0.0 }
 0x11d   :  { %v1035_v16 = vsel %vm20_vm1, %v952_v10, 0.0  ;;  %v1149_v18 = vmul.f32 %v952_v10, %v952_v10  ;;  %889 = vst.msk [vmem:[%s3173_s2 + $0xc0] sm:$0xff] %vm20_vm1, %v824_v51  ;;  %v1545_v19 = vpop.f32.mrb[26].mxu0  ;;  %v2750_v25 = vpop.f32.mrb[26].mxu1 }
 0x11e   :  { %v1036_v20 = vadd.f32 %v1035_v16, %v1034_v13  ;;  %v1231_v21 = vadd.f32 %v1230_v12, %v1229_v9  ;;  %v827_v22 = vadd.f32 %v1545_v19, %v112_v57  ;;  %v611_v23 = vpop.f32.mrb[27].mxu0  ;;  %v2760_v32 = vpop.f32.mrb[27].mxu1  ;;  %v1234_v38 = vsel %vm20_vm1, %v1150_v15, 0.0  ;;  %v964_v57 = vld [vmem:[%s3173_s2 + $0x100] sm:$0xff]  ;;  %v134_v15 = vld [vmem:[%s3173_s2 + $0x188] sm:$0xff] }
 0x11f   :  { %v1232_v62 = vsel %vm20_vm1, %v1149_v18, 0.0  ;;  %v955_v27 = vld [vmem:[%s3173_s2 + $0xb8] sm:$0xff]  ;;  %v826_v28 = vadd.f32 %v611_v23, %v111_v14 }
 0x120   :  { %v1233_v33 = vadd.f32 %v1232_v62, %v1231_v21  ;;  %v954_v34 = vld [vmem:[%s3173_s2 + $0xb0] sm:$0xff]  ;;  %v1038_v35 = vadd.f32 %v1037_v26, %v1036_v20  ;;  %892 = vst.msk [vmem:[%s3173_s2 + $0xd8] sm:$0xff] %vm20_vm1, %v827_v22  ;;  %v1152_v39 = vmul.f32 %v955_v27, %v955_v27  ;;  %v1041_v49 = vsel %vm20_vm1, %v955_v27, 0.0  ;;  %v133_v22 = vld [vmem:[%s3173_s2 + $0x180] sm:$0xff]  ;;  %v136_v23 = vld [vmem:[%s3173_s2 + $0x198] sm:$0xff] }
 0x121   :  { %v1039_v40 = vsel %vm20_vm1, %v954_v34, 0.0  ;;  %v1151_v41 = vmul.f32 %v954_v34, %v954_v34  ;;  %891 = vst.msk [vmem:[%s3173_s2 + $0xd0] sm:$0xff] %vm20_vm1, %v826_v28  ;;  %v1548_v11 = vpop.f32.mrb[28].mxu0  ;;  %v2778_v47 = vpop.f32.mrb[28].mxu1  ;;  %v2841_v28 = vsel %vm20_vm1, %v964_v57, 0.0  ;;  %v2843_v34 = vmul.f32 %v964_v57, %v964_v57 }
 0x122   :  { %v1040_v17 = vadd.f32 %v1039_v40, %v1038_v35  ;;  %v1235_v43 = vadd.f32 %v1234_v38, %v1233_v33  ;;  %v829_v45 = vadd.f32 %v1548_v11, %v114_v30  ;;  %v621_v46 = vpop.f32.mrb[29].mxu0  ;;  %v2788_v37 = vpop.f32.mrb[29].mxu1  ;;  %v1238_v60 = vsel %vm20_vm1, %v1152_v39, 0.0  ;;  %v138_v38 = vld [vmem:[%s3173_s2 + $0x1a8] sm:$0xff] }
 0x123   :  { %v1236_v50 = vsel %vm20_vm1, %v1151_v41, 0.0  ;;  %v957_v53 = vld [vmem:[%s3173_s2 + $0xc8] sm:$0xff]  ;;  %v828_v54 = vadd.f32 %v621_v46, %v113_v36  ;;  %v849_v35 = vadd.f32 %v2567_v42, %v134_v15  ;;  %v135_v36 = vld [vmem:[%s3173_s2 + $0x190] sm:$0xff]  ;;  %v848_v11 = vadd.f32 %v2589_v48, %v133_v22 }
 0x124   :  { %v1237_v55 = vadd.f32 %v1236_v50, %v1235_v43  ;;  %v956_v56 = vld [vmem:[%s3173_s2 + $0xc0] sm:$0xff]  ;;  %v1042_v58 = vadd.f32 %v1041_v49, %v1040_v17  ;;  %894 = vst.msk [vmem:[%s3173_s2 + $0xe8] sm:$0xff] %vm20_vm1, %v829_v45  ;;  %v1154_v61 = vmul.f32 %v957_v53, %v957_v53  ;;  %v1045_v10 = vsel %vm20_vm1, %v957_v53, 0.0  ;;  %v140_v43 = vld [vmem:[%s3173_s2 + $0x1b8] sm:$0xff]  ;;  %v139_v48 = vld [vmem:[%s3173_s2 + $0x1b0] sm:$0xff] }
 0x125   :  { %v1043_v63 = vsel %vm20_vm1, %v956_v56, 0.0  ;;  %v1153_v0 = vmul.f32 %v956_v56, %v956_v56  ;;  %893 = vst.msk [vmem:[%s3173_s2 + $0xe0] sm:$0xff] %vm20_vm1, %v828_v54  ;;  %v1551_v1 = vpop.f32.mrb[30].mxu0  ;;  %v2809_v9 = vpop.f32.mrb[30].mxu1  ;;  %v851_v42 = vadd.f32 %v2621_v3, %v136_v23  ;;  %v137_v17 = vld [vmem:[%s3173_s2 + $0x1a0] sm:$0xff]  ;;  %914 = vst.msk [vmem:[%s3173_s2 + $0x188] sm:$0xff] %vm20_vm1, %v849_v35  ;;  %v853_v56 = vadd.f32 %v2666_v24, %v138_v38 }
 0x126   :  { %v1044_v4 = vadd.f32 %v1043_v63, %v1042_v58  ;;  %v1239_v5 = vadd.f32 %v1238_v60, %v1237_v55  ;;  %v831_v6 = vadd.f32 %v1551_v1, %v116_v31  ;;  %v631_v51 = vpop.f32.mrb[31].mxu0  ;;  %v2819_v16 = vpop.f32.mrb[31].mxu1  ;;  %v1242_v26 = vsel %vm20_vm1, %v1154_v61, 0.0  ;;  %v142_v3 = vld [vmem:[%s3173_s2 + $0x1c8] sm:$0xff]  ;;  %913 = vst.msk [vmem:[%s3173_s2 + $0x180] sm:$0xff] %vm20_vm1, %v848_v11  ;;  %v141_v63 = vld [vmem:[%s3173_s2 + $0x1c0] sm:$0xff] }
 0x127   :  { %v1240_v13 = vsel %vm20_vm1, %v1153_v0, 0.0  ;;  %v959_v14 = vld [vmem:[%s3173_s2 + $0xd8] sm:$0xff]  ;;  %v830_v12 = vadd.f32 %v631_v51, %v115_v59  ;;  %916 = vst.msk [vmem:[%s3173_s2 + $0x198] sm:$0xff] %vm20_vm1, %v851_v42  ;;  %v850_v55 = vadd.f32 %v2640_v8, %v135_v36  ;;  %v852_v61 = vadd.f32 %v2676_v29, %v137_v17  ;;  %918 = vst.msk [vmem:[%s3173_s2 + $0x1a8] sm:$0xff] %vm20_vm1, %v853_v56  ;;  %v965_v23 = vld [vmem:[%s3173_s2 + $0x108] sm:$0xff] }
 0x128   :  { %v1241_v18 = vadd.f32 %v1240_v13, %v1239_v5  ;;  %v1156_v19 = vmul.f32 %v959_v14, %v959_v14  ;;  %v958_v20 = vld [vmem:[%s3173_s2 + $0xd0] sm:$0xff]  ;;  %v1046_v21 = vadd.f32 %v1045_v10, %v1044_v4  ;;  %896 = vst.msk [vmem:[%s3173_s2 + $0xf8] sm:$0xff] %vm20_vm1, %v831_v6  ;;  %v1049_v39 = vsel %vm20_vm1, %v959_v14, 0.0  ;;  %v144_v0 = vld [vmem:[%s3173_s2 + $0x1d8] sm:$0xff]  ;;  %v146_v6 = vld [vmem:[%s3173_s2 + $0x1e8] sm:$0xff] }
 0x129   :  { %v1047_v62 = vsel %vm20_vm1, %v958_v20, 0.0  ;;  %v1155_v27 = vmul.f32 %v958_v20, %v958_v20  ;;  %895 = vst.msk [vmem:[%s3173_s2 + $0xf0] sm:$0xff] %vm20_vm1, %v830_v12  ;;  %915 = vst.msk [vmem:[%s3173_s2 + $0x190] sm:$0xff] %vm20_vm1, %v850_v55  ;;  %v855_v24 = vadd.f32 %v2694_v44, %v140_v43  ;;  %v854_v29 = vadd.f32 %v2704_v52, %v139_v48  ;;  %v143_v5 = vld [vmem:[%s3173_s2 + $0x1d0] sm:$0xff]  ;;  %v145_v52 = vld [vmem:[%s3173_s2 + $0x1e0] sm:$0xff] }
 0x12a   :  { %v1048_v30 = vadd.f32 %v1047_v62, %v1046_v21  ;;  %v1243_v33 = vadd.f32 %v1242_v26, %v1241_v18  ;;  %v1246_v45 = vsel %vm20_vm1, %v1156_v19, 0.0  ;;  %v857_v4 = vadd.f32 %v2722_v2, %v142_v3  ;;  %917 = vst.msk [vmem:[%s3173_s2 + $0x1a0] sm:$0xff] %vm20_vm1, %v852_v61  ;;  %v148_v2 = vld [vmem:[%s3173_s2 + $0x1f8] sm:$0xff]  ;;  %v147_v19 = vld [vmem:[%s3173_s2 + $0x1f0] sm:$0xff] }
 0x12b   :  { %v1244_v40 = vsel %vm20_vm1, %v1155_v27, 0.0  ;;  %v961_v41 = vld [vmem:[%s3173_s2 + $0xe8] sm:$0xff]  ;;  %920 = vst.msk [vmem:[%s3173_s2 + $0x1b8] sm:$0xff] %vm20_vm1, %v855_v24  ;;  %919 = vst.msk [vmem:[%s3173_s2 + $0x1b0] sm:$0xff] %vm20_vm1, %v854_v29  ;;  %v856_v15 = vadd.f32 %v2732_v7, %v141_v63  ;;  %v859_v18 = vadd.f32 %v2750_v25, %v144_v0  ;;  %v966_v26 = vld [vmem:[%s3173_s2 + $0x110] sm:$0xff]  ;;  %v858_v7 = vadd.f32 %v2760_v32, %v143_v5 }
 0x12c   :  { %v1245_v46 = vadd.f32 %v1244_v40, %v1243_v33  ;;  %v1158_v49 = vmul.f32 %v961_v41, %v961_v41  ;;  %v960_v50 = vld [vmem:[%s3173_s2 + $0xe0] sm:$0xff]  ;;  %v1050_v53 = vadd.f32 %v1049_v39, %v1048_v30  ;;  %v1053_v58 = vsel %vm20_vm1, %v961_v41, 0.0  ;;  %922 = vst.msk [vmem:[%s3173_s2 + $0x1c8] sm:$0xff] %vm20_vm1, %v857_v4  ;;  %v971_v63 = vld [vmem:[%s3173_s2 + $0x138] sm:$0xff] }
 0x12d   :  { %v1051_v54 = vsel %vm20_vm1, %v960_v50, 0.0  ;;  %v1157_v31 = vmul.f32 %v960_v50, %v960_v50  ;;  %921 = vst.msk [vmem:[%s3173_s2 + $0x1c0] sm:$0xff] %vm20_vm1, %v856_v15  ;;  %924 = vst.msk [vmem:[%s3173_s2 + $0x1d8] sm:$0xff] %vm20_vm1, %v859_v18  ;;  %v861_v62 = vadd.f32 %v2778_v47, %v146_v6  ;;  %v860_v27 = vadd.f32 %v2788_v37, %v145_v52  ;;  %v969_v50 = vld [vmem:[%s3173_s2 + $0x128] sm:$0xff]  ;;  %v972_v0 = vld [vmem:[%s3173_s2 + $0x140] sm:$0xff] }
 0x12e   :  { %v1052_v59 = vadd.f32 %v1051_v54, %v1050_v53  ;;  %v1247_v60 = vadd.f32 %v1246_v45, %v1245_v46  ;;  %v1250_v51 = vsel %vm20_vm1, %v1158_v49, 0.0  ;;  %v863_v30 = vadd.f32 %v2809_v9, %v148_v2  ;;  %923 = vst.msk [vmem:[%s3173_s2 + $0x1d0] sm:$0xff] %vm20_vm1, %v858_v7  ;;  %v970_v53 = vld [vmem:[%s3173_s2 + $0x130] sm:$0xff] }
 0x12f   :  { %v1248_v1 = vsel %vm20_vm1, %v1157_v31, 0.0  ;;  %v963_v8 = vld [vmem:[%s3173_s2 + $0xf8] sm:$0xff]  ;;  %v862_v35 = vadd.f32 %v2819_v16, %v147_v19  ;;  %v1162_v38 = vmul.f32 %v965_v23, %v965_v23  ;;  %v1256_v39 = vsel %vm20_vm1, %v2843_v34, 0.0  ;;  %926 = vst.msk [vmem:[%s3173_s2 + $0x1e8] sm:$0xff] %vm20_vm1, %v861_v62  ;;  %925 = vst.msk [vmem:[%s3173_s2 + $0x1e0] sm:$0xff] %vm20_vm1, %v860_v27  ;;  %v968_v34 = vld [vmem:[%s3173_s2 + $0x120] sm:$0xff] }
 0x130   :  { %v1249_v57 = vadd.f32 %v1248_v1, %v1247_v60  ;;  %v1160_v10 = vmul.f32 %v963_v8, %v963_v8  ;;  %v962_v44 = vld [vmem:[%s3173_s2 + $0xf0] sm:$0xff]  ;;  %v1054_v13 = vadd.f32 %v1053_v58, %v1052_v59  ;;  %v1057_v20 = vsel %vm20_vm1, %v963_v8, 0.0  ;;  %928 = vst.msk [vmem:[%s3173_s2 + $0x1f8] sm:$0xff] %vm20_vm1, %v863_v30  ;;  %v967_v16 = vld [vmem:[%s3173_s2 + $0x118] sm:$0xff] }
 0x131   :  { %v1055_v14 = vsel %vm20_vm1, %v962_v44, 0.0  ;;  %v1159_v12 = vmul.f32 %v962_v44, %v962_v44  ;;  %v1163_v47 = vmul.f32 %v966_v26, %v966_v26  ;;  %927 = vst.msk [vmem:[%s3173_s2 + $0x1f0] sm:$0xff] %vm20_vm1, %v862_v35  ;;  %v1061_v40 = vsel %vm20_vm1, %v965_v23, 0.0  ;;  %v973_v44 = vld [vmem:[%s3173_s2 + $0x148] sm:$0xff]  ;;  %v975_v23 = vld [vmem:[%s3173_s2 + $0x158] sm:$0xff] }
 0x132   :  { %v1056_v21 = vadd.f32 %v1055_v14, %v1054_v13  ;;  %v1251_v22 = vadd.f32 %v1250_v51, %v1249_v57  ;;  %v1254_v36 = vsel %vm20_vm1, %v1160_v10, 0.0  ;;  %v1063_v41 = vsel %vm20_vm1, %v966_v26, 0.0  ;;  %v974_v13 = vld [vmem:[%s3173_s2 + $0x150] sm:$0xff]  ;;  %v976_v26 = vld [vmem:[%s3173_s2 + $0x160] sm:$0xff] }
 0x133   :  { %v1252_v25 = vsel %vm20_vm1, %v1159_v12, 0.0  ;;  %v1258_v42 = vsel %vm20_vm1, %v1162_v38, 0.0  ;;  %v1164_v17 = vmul.f32 %v967_v16, %v967_v16  ;;  %v1260_v43 = vsel %vm20_vm1, %v1163_v47, 0.0  ;;  %v978_v47 = vld [vmem:[%s3173_s2 + $0x170] sm:$0xff] }
 0x134   :  { %v1253_v33 = vadd.f32 %v1252_v25, %v1251_v22  ;;  %v1058_v32 = vadd.f32 %v1057_v20, %v1056_v21  ;;  %v1165_v45 = vmul.f32 %v968_v34, %v968_v34  ;;  %v1065_v48 = vsel %vm20_vm1, %v967_v16, 0.0 }
 0x135   :  { %v1067_v3 = vsel %vm20_vm1, %v968_v34, 0.0  ;;  %v1262_v55 = vsel %vm20_vm1, %v1164_v17, 0.0  ;;  %v1166_v56 = vmul.f32 %v969_v50, %v969_v50  ;;  %v1167_v59 = vmul.f32 %v970_v53, %v970_v53 }
 0x136   :  { %v1060_v37 = vadd.f32 %v2841_v28, %v1058_v32  ;;  %v1255_v9 = vadd.f32 %v1254_v36, %v1253_v33  ;;  %v1264_v58 = vsel %vm20_vm1, %v1165_v45, 0.0  ;;  %v1069_v1 = vsel %vm20_vm1, %v969_v50, 0.0  ;;  %v980_v45 = vld [vmem:[%s3173_s2 + $0x180] sm:$0xff] }
 0x137   :  { %v1071_v8 = vsel %vm20_vm1, %v970_v53, 0.0  ;;  %v1266_v4 = vsel %vm20_vm1, %v1166_v56, 0.0  ;;  %v1168_v5 = vmul.f32 %v971_v63, %v971_v63  ;;  %v1268_v6 = vsel %vm20_vm1, %v1167_v59, 0.0  ;;  %v982_v59 = vld [vmem:[%s3173_s2 + $0x190] sm:$0xff] }
 0x138   :  { %v1257_v11 = vadd.f32 %v1256_v39, %v1255_v9  ;;  %v1062_v28 = vadd.f32 %v1061_v40, %v1060_v37  ;;  %v1169_v51 = vmul.f32 %v972_v0, %v972_v0  ;;  %v1073_v52 = vsel %vm20_vm1, %v971_v63, 0.0  ;;  %v977_v39 = vld [vmem:[%s3173_s2 + $0x168] sm:$0xff] }
 0x139   :  { %v1075_v2 = vsel %vm20_vm1, %v972_v0, 0.0  ;;  %v1270_v15 = vsel %vm20_vm1, %v1168_v5, 0.0  ;;  %v1170_v18 = vmul.f32 %v973_v44, %v973_v44  ;;  %v1171_v20 = vmul.f32 %v974_v13, %v974_v13  ;;  %v984_v5 = vld [vmem:[%s3173_s2 + $0x1a0] sm:$0xff] }
 0x13a   :  { %v1064_v46 = vadd.f32 %v1063_v41, %v1062_v28  ;;  %v1259_v49 = vadd.f32 %v1258_v42, %v1257_v11  ;;  %v1272_v19 = vsel %vm20_vm1, %v1169_v51, 0.0  ;;  %v1077_v7 = vsel %vm20_vm1, %v973_v44, 0.0 }
 0x13b   :  { %v1079_v25 = vsel %vm20_vm1, %v974_v13, 0.0  ;;  %v1274_v30 = vsel %vm20_vm1, %v1170_v18, 0.0  ;;  %v1172_v33 = vmul.f32 %v975_v23, %v975_v23  ;;  %v1276_v32 = vsel %vm20_vm1, %v1171_v20, 0.0  ;;  %v986_v18 = vld [vmem:[%s3173_s2 + $0x1b0] sm:$0xff] }
 0x13c   :  { %v1261_v54 = vadd.f32 %v1260_v43, %v1259_v49  ;;  %v1066_v31 = vadd.f32 %v1065_v48, %v1064_v46  ;;  %v1173_v35 = vmul.f32 %v976_v26, %v976_v26  ;;  %v1081_v37 = vsel %vm20_vm1, %v975_v23, 0.0  ;;  %v979_v43 = vld [vmem:[%s3173_s2 + $0x178] sm:$0xff] }
 0x13d   :  { %v1083_v9 = vsel %vm20_vm1, %v976_v26, 0.0  ;;  %v1278_v40 = vsel %vm20_vm1, %v1172_v33, 0.0  ;;  %v1174_v41 = vmul.f32 %v977_v39, %v977_v39  ;;  %v1175_v28 = vmul.f32 %v978_v47, %v978_v47  ;;  %v988_v33 = vld [vmem:[%s3173_s2 + $0x1c0] sm:$0xff] }
 0x13e   :  { %v1068_v60 = vadd.f32 %v1067_v3, %v1066_v31  ;;  %v1263_v61 = vadd.f32 %v1262_v55, %v1261_v54  ;;  %v1280_v11 = vsel %vm20_vm1, %v1173_v35, 0.0  ;;  %v1085_v46 = vsel %vm20_vm1, %v977_v39, 0.0 }
 0x13f   :  { %v1087_v49 = vsel %vm20_vm1, %v978_v47, 0.0  ;;  %v1282_v48 = vsel %vm20_vm1, %v1174_v41, 0.0  ;;  %v1176_v3 = vmul.f32 %v979_v43, %v979_v43  ;;  %v1284_v54 = vsel %vm20_vm1, %v1175_v28, 0.0  ;;  %v990_v41 = vld [vmem:[%s3173_s2 + $0x1d0] sm:$0xff] }
 0x140   :  { %v1265_v24 = vadd.f32 %v1264_v58, %v1263_v61  ;;  %v1070_v29 = vadd.f32 %v1069_v1, %v1068_v60  ;;  %v1177_v31 = vmul.f32 %v980_v45, %v980_v45  ;;  %v981_v58 = vld [vmem:[%s3173_s2 + $0x188] sm:$0xff]  ;;  %v1089_v60 = vsel %vm20_vm1, %v979_v43, 0.0 }
 0x141   :  { %v1091_v61 = vsel %vm20_vm1, %v980_v45, 0.0  ;;  %v1286_v1 = vsel %vm20_vm1, %v1176_v3, 0.0  ;;  %v992_v3 = vld [vmem:[%s3173_s2 + $0x1e0] sm:$0xff] }
 0x142   :  { %v1072_v57 = vadd.f32 %v1071_v8, %v1070_v29  ;;  %v1267_v10 = vadd.f32 %v1266_v4, %v1265_v24  ;;  %v1178_v8 = vmul.f32 %v981_v58, %v981_v58  ;;  %v1288_v24 = vsel %vm20_vm1, %v1177_v31, 0.0  ;;  %v983_v4 = vld [vmem:[%s3173_s2 + $0x198] sm:$0xff] }
 0x143   :  { %v1179_v29 = vmul.f32 %v982_v59, %v982_v59 }
 0x144   :  { %v1269_v14 = vadd.f32 %v1268_v6, %v1267_v10  ;;  %v1074_v12 = vadd.f32 %v1073_v52, %v1072_v57  ;;  %v1093_v57 = vsel %vm20_vm1, %v981_v58, 0.0  ;;  %v1095_v10 = vsel %vm20_vm1, %v982_v59, 0.0 }
 0x145   :  { %v1180_v52 = vmul.f32 %v983_v4, %v983_v4 }
 0x146   :  { %v1076_v21 = vadd.f32 %v1075_v2, %v1074_v12  ;;  %v1271_v22 = vadd.f32 %v1270_v15, %v1269_v14  ;;  %v1181_v2 = vmul.f32 %v984_v5, %v984_v5  ;;  %v1290_v14 = vsel %vm20_vm1, %v1178_v8, 0.0  ;;  %v985_v15 = vld [vmem:[%s3173_s2 + $0x1a8] sm:$0xff]  ;;  %v994_v8 = vld [vmem:[%s3173_s2 + $0x1f0] sm:$0xff] }
 0x147   :  { %v1292_v12 = vsel %vm20_vm1, %v1179_v29, 0.0 }
 0x148   :  { %v1273_v62 = vadd.f32 %v1272_v19, %v1271_v22  ;;  %v1078_v27 = vadd.f32 %v1077_v7, %v1076_v21  ;;  %v1097_v21 = vsel %vm20_vm1, %v983_v4, 0.0  ;;  %v1099_v22 = vsel %vm20_vm1, %v984_v5, 0.0 }
 0x149   :  { %v1182_v7 = vmul.f32 %v985_v15, %v985_v15  ;;  %v1115_v5 = vsel %vm20_vm1, %v992_v3, 0.0 }
 0x14a   :  { %v1080_v36 = vadd.f32 %v1079_v25, %v1078_v27  ;;  %v1275_v38 = vadd.f32 %v1274_v30, %v1273_v62  ;;  %v1183_v25 = vmul.f32 %v986_v18, %v986_v18  ;;  %v1294_v62 = vsel %vm20_vm1, %v1180_v52, 0.0  ;;  %v987_v30 = vld [vmem:[%s3173_s2 + $0x1b8] sm:$0xff] }
 0x14b   :  { %v1296_v27 = vsel %vm20_vm1, %v1181_v2, 0.0  ;;  %v995_v52 = vld [vmem:[%s3173_s2 + $0x1f8] sm:$0xff] }
 0x14c   :  { %v1277_v16 = vadd.f32 %v1276_v32, %v1275_v38  ;;  %v1082_v34 = vadd.f32 %v1081_v37, %v1080_v36  ;;  %v1101_v36 = vsel %vm20_vm1, %v985_v15, 0.0  ;;  %v1103_v38 = vsel %vm20_vm1, %v986_v18, 0.0 }
 0x14d   :  { %v1184_v37 = vmul.f32 %v987_v30, %v987_v30  ;;  %v1119_v15 = vsel %vm20_vm1, %v994_v8, 0.0 }
 0x14e   :  { %v1084_v42 = vadd.f32 %v1083_v9, %v1082_v34  ;;  %v1279_v17 = vadd.f32 %v1278_v40, %v1277_v16  ;;  %v1185_v9 = vmul.f32 %v988_v33, %v988_v33  ;;  %v1298_v16 = vsel %vm20_vm1, %v1182_v7, 0.0  ;;  %v989_v40 = vld [vmem:[%s3173_s2 + $0x1c8] sm:$0xff] }
 0x14f   :  { %v1300_v34 = vsel %vm20_vm1, %v1183_v25, 0.0  ;;  %v1121_v7 = vsel %vm20_vm1, %v995_v52, 0.0 }
 0x150   :  { %v1281_v50 = vadd.f32 %v1280_v11, %v1279_v17  ;;  %v1086_v53 = vadd.f32 %v1085_v46, %v1084_v42  ;;  %v1105_v42 = vsel %vm20_vm1, %v987_v30, 0.0  ;;  %v1107_v17 = vsel %vm20_vm1, %v988_v33, 0.0 }
 0x151   :  { %v1186_v46 = vmul.f32 %v989_v40, %v989_v40 }
 0x152   :  { %v1088_v55 = vadd.f32 %v1087_v49, %v1086_v53  ;;  %v1283_v56 = vadd.f32 %v1282_v48, %v1281_v50  ;;  %v1187_v49 = vmul.f32 %v990_v41, %v990_v41  ;;  %v1302_v50 = vsel %vm20_vm1, %v1184_v37, 0.0  ;;  %v991_v48 = vld [vmem:[%s3173_s2 + $0x1d8] sm:$0xff] }
 0x153   :  { %v1304_v53 = vsel %vm20_vm1, %v1185_v9, 0.0  ;;  %v1113_v4 = vsel %vm20_vm1, %v991_v48, 0.0 }
 0x154   :  { %v1285_v63 = vadd.f32 %v1284_v54, %v1283_v56  ;;  %v1090_v0 = vadd.f32 %v1089_v60, %v1088_v55  ;;  %v1109_v55 = vsel %vm20_vm1, %v989_v40, 0.0  ;;  %v1111_v56 = vsel %vm20_vm1, %v990_v41, 0.0 }
 0x155   :  { %v1188_v60 = vmul.f32 %v991_v48, %v991_v48 }
 0x156   :  { %v1092_v6 = vadd.f32 %v1091_v61, %v1090_v0  ;;  %v1287_v51 = vadd.f32 %v1286_v1, %v1285_v63  ;;  %v1189_v61 = vmul.f32 %v992_v3, %v992_v3  ;;  %v1306_v63 = vsel %vm20_vm1, %v1186_v46, 0.0  ;;  %v993_v1 = vld [vmem:[%s3173_s2 + $0x1e8] sm:$0xff]  ;;  %s1666_s2 = smov [#allocation2]  }
 0x157   :  { %v1308_v0 = vsel %vm20_vm1, %v1187_v49, 0.0  ;;  %s1336_s8 = sshll.u32 %s1666_s2, 4  ;;  %s1337_s8 = int_to_ptr.vmem [resolvable:$true] %s1336_s8 }
 0x158   :  { %v1094_v44 = vadd.f32 %v1093_v57, %v1092_v6  ;;  %v1289_v13 = vadd.f32 %v1288_v24, %v1287_v51  ;;  %v1190_v57 = vmul.f32 %v993_v1, %v993_v1  ;;  %s1617_s11 = scalar_lea.vmem %s1337_s8, 128  ;;  %p1622_p1 = scmp.lt.s32.totalorder %s1337_s8, %s1337_s8 }
 0x159   :  { %p1618_p0 = scmp.ne.s32.totalorder %s1337_s8, %s1617_s11  ;;  %p1623_p2 = scmp.lt.s32.totalorder %s1617_s11, %s1617_s11 }
 0x15a   :  { %v1096_v19 = vadd.f32 %v1095_v10, %v1094_v44  ;;  %v1291_v20 = vadd.f32 %v1290_v14, %v1289_v13  ;;  %v1191_v10 = vmul.f32 %v994_v8, %v994_v8  ;;  %v1310_v44 = vsel %vm20_vm1, %v1188_v60, 0.0 }
 0x15b   :  { %v1312_v13 = vsel %vm20_vm1, %v1189_v61, 0.0  ;;  %p1624_p3 = por %p1623_p2, %p1622_p1 }
 0x15c   :  { %v1098_v23 = vadd.f32 %v1097_v21, %v1096_v19  ;;  %v1293_v26 = vadd.f32 %v1292_v12, %v1291_v20  ;;  %v1117_v12 = vsel %vm20_vm1, %v993_v1, 0.0  ;;  %v1192_v20 = vmul.f32 %v995_v52, %v995_v52 }
 0x15d   :  { %v1314_v21 = vsel %vm20_vm1, %v1190_v57, 0.0  ;;  %p1625_p4 = pnand %p1624_p3, %p1618_p0 }
 0x15e   :  { %v1100_v32 = vadd.f32 %v1099_v22, %v1098_v23  ;;  %v1295_v35 = vadd.f32 %v1294_v62, %v1293_v26  ;;  %v1316_v22 = vsel %vm20_vm1, %v1191_v10, 0.0 }
 0x160   :  { %v1102_v39 = vadd.f32 %v1101_v36, %v1100_v32  ;;  %v1297_v47 = vadd.f32 %v1296_v27, %v1295_v35  ;;  %v1318_v27 = vsel %vm20_vm1, %v1192_v20, 0.0 }
 0x162   :  { %v1104_v11 = vadd.f32 %v1103_v38, %v1102_v39  ;;  %v1299_v28 = vadd.f32 %v1298_v16, %v1297_v47 }
 0x164   :  { %v1106_v43 = vadd.f32 %v1105_v42, %v1104_v11  ;;  %v1301_v45 = vadd.f32 %v1300_v34, %v1299_v28 }
 0x166   :  { %v1108_v54 = vadd.f32 %v1107_v17, %v1106_v43  ;;  %v1303_v31 = vadd.f32 %v1302_v50, %v1301_v45 }
 0x168   :  { %v1110_v58 = vadd.f32 %v1109_v55, %v1108_v54  ;;  %v1305_v59 = vadd.f32 %v1304_v53, %v1303_v31 }
 0x16a   :  { %v1112_v24 = vadd.f32 %v1111_v56, %v1110_v58  ;;  %v1307_v29 = vadd.f32 %v1306_v63, %v1305_v59 }
 0x16c   :  { %v1114_v6 = vadd.f32 %v1113_v4, %v1112_v24  ;;  %v1309_v51 = vadd.f32 %v1308_v0, %v1307_v29 }
 0x16e   :  { %v1116_v2 = vadd.f32 %v1115_v5, %v1114_v6  ;;  %v1311_v14 = vadd.f32 %v1310_v44, %v1309_v51 }
 0x170   :  { %v1118_v18 = vadd.f32 %v1117_v12, %v1116_v2  ;;  %v1313_v19 = vadd.f32 %v1312_v13, %v1311_v14 }
 0x172   :  { %v1120_v23 = vadd.f32 %v1119_v15, %v1118_v18  ;;  %v1315_v26 = vadd.f32 %v1314_v21, %v1313_v19 }
 0x174   :  { %v1122_v25 = vadd.f32 %v1121_v7, %v1120_v23  ;;  %v1317_v62 = vadd.f32 %v1316_v22, %v1315_v26 }
 0x176   :  { %v1123_v30 = vrot.slane %v1122_v25, 4  ;;  %v1319_v33 = vadd.f32 %v1318_v27, %v1317_v62 }
 0x178   :  { %v1124_v32 = vadd.f32 %v1123_v30, %v1122_v25  ;;  %v1320_v35 = vrot.slane %v1319_v33, 4 }
 0x17a   :  { %v1125_v36 = vrot.slane %v1124_v32, 2  ;;  %v1321_v38 = vadd.f32 %v1320_v35, %v1319_v33 }
 0x17c   :  { %v1126_v39 = vadd.f32 %v1125_v36, %v1124_v32  ;;  %v1322_v47 = vrot.slane %v1321_v38, 2 }
 0x17e   :  { %v1127_v37 = vrot.slane %v1126_v39, 1  ;;  %v1323_v9 = vadd.f32 %v1322_v47, %v1321_v38 }
 0x180   :  { %v1128_v16 = vadd.f32 %v1127_v37, %v1126_v39  ;;  %v1324_v34 = vrot.slane %v1323_v9, 1 }
 0x182   :  { %1326 = vst.msk [vmem:[#allocation2] sm:$0xff] %vm20_vm1, %v1128_v16  ;;  %v1325_v40 = vadd.f32 %v1324_v34, %v1323_v9 }
 0x183   :  { %1628 = shalt.err (!%p1625_p4)
}
 0x184   :  { %s1629_s14 = scalar_lea.hbm %s3174_s3, 128 }
 0x185   :  { %p1630_p5 = scmp.ne.s32.totalorder %s3174_s3, %s1629_s14  ;;  %p1633_p6 = scmp.lt.u32.totalorder %s1629_s14, %s3174_s3 }
 0x187   :  { %p1635_p7 = pnand %p1633_p6, %p1630_p5 }
 0x189   :  { %1638 = shalt.err (!%p1635_p7)
}
 0x18a   :  { %1339 = dma.vmem_to_hbm [thread:$0]  %s1337_s8, 128, %s3174_s3, [#allocation3]   ;;  %1327 = vst.msk [vmem:[#allocation4] sm:$0xff] %vm20_vm1, %v1325_v40 }
 0x18b   :  { %s1639_s21 = scalar_lea.vmem %s1347_s10, 128  ;;  %p1644_p9 = scmp.lt.s32.totalorder %s1347_s10, %s1347_s10 }
 0x18c   :  { %p1640_p8 = scmp.ne.s32.totalorder %s1347_s10, %s1639_s21  ;;  %p1645_p10 = scmp.lt.s32.totalorder %s1639_s21, %s1639_s21 }
 0x18e   :  { %p1646_p11 = por %p1645_p10, %p1644_p9 }
 0x190   :  { %p1647_p12 = pnand %p1646_p11, %p1640_p8 }
 0x192   :  { %1650 = shalt.err (!%p1647_p12)
}
 0x193   :  { %s1651_s0 = scalar_lea.hbm %s3175_s4, 128 }
 0x194   :  { %p1652_p13 = scmp.ne.s32.totalorder %s3175_s4, %s1651_s0  ;;  %p1655_p0 = scmp.lt.u32.totalorder %s1651_s0, %s3175_s4 }
 0x196   :  { %p1657_p1 = pnand %p1655_p0, %p1652_p13 }
 0x198   :  { %1660 = shalt.err (!%p1657_p1)
}
 0x199   :  { %1349 = dma.vmem_to_hbm [thread:$0]  %s1347_s10, 128, %s3175_s4, [#allocation5]  }
 0x19a   :  { %1661 = dma.done.wait [#allocation3], 128  }
 0x19b   :  { %1662 = vsyncadd [#allocation3], 4294967168 }
 0x19c   :  { %1663 = dma.done.wait [#allocation5], 128  }
 0x19d   :  { %1664 = vsyncadd [#allocation5], 4294967168 }
 0x19e   :  { %1358 = vsyncpa [#allocation3], 1 }
 0x19f   :  { %1359 = vsyncpa [#allocation5], 1 }

</bundles_post_ra>
